<compile_context>
chip_gen: v5e
topology: v5e:2x2
jax: 0.10.0
libtpu: 0.0.40
codegen_flags: <defaults>
</compile_context>

<pallas_src>
import functools

import jax
import jax.numpy as jnp
from jax import lax
from jax.experimental import pallas as pl
from jax.experimental.pallas import tpu as pltpu

C_FEAT = 64          # nf = 64 in the module
CP = 128             # padded channel width of the augmented map (64 feat + conf + 0s)
BN_EPS = 1e-5
N1_SLICE = 32        # N1 in forward()
N2_SLICE = 512 * 32  # N2 in forward()


def _round_up(x, m):
    return ((x + m - 1) // m) * m


def _vmem_limit(bytes_needed):
    """Explicit scoped-VMEM budget with headroom (review: declare per kernel)."""
    return int(min(max(int(bytes_needed) + (4 << 20), 16 << 20), 100 << 20))


# ----------------------------------------------------------------------------
# Kernel A: fused 1x1-conv MLP heads over a full descriptor map (transposed).
#   x tile : (1, C, T)   channel-first slab of the (B, C, H*W) map
#   w      : (NH, C)     folded head weights  (regress_conf, binary_class)
#   b      : (NH, 1)     folded head biases
#   out    : (1, NH, T)  sigmoid(w @ x + b)   -> lane-dense stores
# ----------------------------------------------------------------------------
def _heads_kernel(x_ref, w_ref, b_ref, o_ref):
    z = jnp.dot(w_ref[...], x_ref[0], preferred_element_type=jnp.float32)
    o_ref[0] = jax.nn.sigmoid(z + b_ref[...])


def fused_heads_map(feat_bchw, w_heads, b_heads, t_hw=16384):
    """feat: (B,C,H,W); w_heads: (NH,C); b_heads: (NH,1) -> (B, NH, H*W)."""
    B, C, H, W = feat_bchw.shape
    hw = H * W
    x = feat_bchw.reshape(B, C, hw)
    if hw <= t_hw:
        t, hw_p = hw, hw
    else:
        t = t_hw                        # multiple of 128
        hw_p = _round_up(hw, t)
    if hw_p != hw:
        x = jnp.pad(x, ((0, 0), (0, 0), (0, hw_p - hw)))
    nh = w_heads.shape[0]
    limit = _vmem_limit(2 * (C * t * 4 + nh * t * 4))
    out = pl.pallas_call(
        _heads_kernel,
        out_shape=jax.ShapeDtypeStruct((B, nh, hw_p), jnp.float32),
        grid_spec=pltpu.PrefetchScalarGridSpec(
            num_scalar_prefetch=0,
            grid=(B, hw_p // t),
            in_specs=[
                pl.BlockSpec((1, C, t), lambda b, i: (b, 0, i)),
                pl.BlockSpec((nh, C), lambda b, i: (0, 0)),
                pl.BlockSpec((nh, 1), lambda b, i: (0, 0)),
            ],
            out_specs=pl.BlockSpec((1, nh, t), lambda b, i: (b, 0, i)),
        ),
        compiler_params=pltpu.CompilerParams(
            dimension_semantics=("parallel", "parallel"),
            vmem_limit_bytes=limit),
    )(x, w_heads.astype(x.dtype), b_heads.astype(jnp.float32))
    return out[:, :, :hw] if hw_p != hw else out


# ----------------------------------------------------------------------------
# Kernel B: gather-based grid_sample + fused confidence sample + NormBlock L2.
#   idx    : SMEM (Bt, S*4) int32  flat corner indices into H*W
#   wgt    : SMEM (Bt, S*4) f32    bilinear corner weights (0 when outside)
#   f      : VMEM (HWp, 128)       channel-last [feat(64) | conf | zeros] map
#   out    : VMEM (TS, 128)        lanes [0,64): L2-normalized feature,
#                                  lane 64: sampled confidence
# Per sample point: 4 dynamic row loads, VPU weighted sum, rsqrt normalize.
# ----------------------------------------------------------------------------
def _gather_sample_norm_kernel(idx_ref, wgt_ref, f_ref, o_ref, acc_ref):
    b = pl.program_id(0)
    i = pl.program_id(1)
    ts = acc_ref.shape[0]

    def body(s, carry):
        base = (i * ts + s) * 4
        r = wgt_ref[b, base] * f_ref[pl.ds(idx_ref[b, base], 1), :]
        r = r + wgt_ref[b, base + 1] * f_ref[pl.ds(idx_ref[b, base + 1], 1), :]
        r = r + wgt_ref[b, base + 2] * f_ref[pl.ds(idx_ref[b, base + 2], 1), :]
        r = r + wgt_ref[b, base + 3] * f_ref[pl.ds(idx_ref[b, base + 3], 1), :]
        acc_ref[pl.ds(s, 1), :] = r
        return carry

    lax.fori_loop(0, ts, body, 0, unroll=(ts <= 32))

    a = acc_ref[...]
    lane = lax.broadcasted_iota(jnp.int32, a.shape, dimension=1)
    is_feat = lane < C_FEAT
    ssq = jnp.sum(jnp.where(is_feat, a * a, 0.0), axis=-1, keepdims=True)
    inv = lax.rsqrt(ssq + 1e-12)
    # TODO(synk): torch F.normalize clamps the norm (max(norm, eps)); this uses
    # rsqrt(ssq + 1e-12) -- numerically equivalent for non-degenerate rows.
    o_ref[...] = jnp.where(is_feat, a * inv, a)


def gather_sample_norm(idx, wgt, aug, ts_max=512):
    """idx/wgt: (Bt, S*4); aug: (Bt, HWp, 128). Returns (Bt, S, 128) rows with
    normalized features in lanes [0,64) and sampled confidence at lane 64."""
    Bt, HWp, cp = aug.shape
    S = idx.shape[1] // 4
    if S <= ts_max:
        ts = max(_round_up(S, 8), 8)
        s_p = ts
    else:
        ts = ts_max
        s_p = _round_up(S, ts)
    if s_p != S:
        pad = (s_p - S) * 4          # zero weight + index 0 -> zero rows
        idx = jnp.pad(idx, ((0, 0), (0, pad)))
        wgt = jnp.pad(wgt, ((0, 0), (0, pad)))

    # TODO(synk): for very large H*W the whole (HWp,128) map no longer fits
    # VMEM; switch the map operand to memory_space=pl.ANY + per-point manual
    # async-copy gather from HBM.
    limit = _vmem_limit(2 * (HWp * cp * 4) + 3 * (ts * cp * 4))

    out = pl.pallas_call(
        _gather_sample_norm_kernel,
        out_shape=jax.ShapeDtypeStruct((Bt, s_p, cp), jnp.float32),
        grid_spec=pltpu.PrefetchScalarGridSpec(
            num_scalar_prefetch=0,
            grid=(Bt, s_p // ts),
            in_specs=[
                pl.BlockSpec(memory_space=pltpu.MemorySpace.SMEM),
                pl.BlockSpec(memory_space=pltpu.MemorySpace.SMEM),
                pl.BlockSpec((None, HWp, cp), lambda b, i: (b, 0, 0)),
            ],
            out_specs=pl.BlockSpec((None, ts, cp), lambda b, i: (b, i, 0)),
            scratch_shapes=[pltpu.VMEM((ts, cp), jnp.float32)],
        ),
        compiler_params=pltpu.CompilerParams(
            dimension_semantics=("parallel", "parallel"),
            vmem_limit_bytes=limit),
    )(idx, wgt, aug)
    return out[:, :S] if s_p != S else out


# ----------------------------------------------------------------------------
# Kernel C: decision(compAll=True) pairwise hinge distances.
#   dist = ||a||^2 + ||b||^2 - 2 a.b  (exact sum((a-b)^2), bf16 streamed
#   operands, f32 accumulation; the ||b||^2 row broadcast is done with a
#   second MXU matmul against a ones matrix -- no vector transposes).
# ----------------------------------------------------------------------------
def _pairwise_kernel(a_ref, b_ref, o_ref):
    a = a_ref[0]                                    # (n1, c)  bf16
    bb = b_ref[0]                                   # (tn2, c) bf16
    ab = lax.dot_general(a, bb, (((1,), (1,)), ((), ())),
                         preferred_element_type=jnp.float32)       # (n1, tn2)
    b2 = lax.dot_general(jnp.ones_like(a), bb * bb, (((1,), (1,)), ((), ())),
                         preferred_element_type=jnp.float32)       # (n1, tn2)
    a32 = a.astype(jnp.float32)
    a2 = jnp.sum(a32 * a32, axis=-1, keepdims=True)                # (n1, 1)
    o_ref[0] = jnp.maximum(a2 + b2 - 2.0 * ab, 0.0)


def pairwise_dist(a_bnc, b_bnc, tn2=8192):
    B, n1, c = a_bnc.shape
    _, n2, _ = b_bnc.shape
    if n2 <= tn2:
        t = _round_up(n2, 8)
        n2_p = t
    else:
        t = tn2                        # multiple of 128
        n2_p = _round_up(n2, t)
    b = jnp.pad(b_bnc, ((0, 0), (0, n2_p - n2), (0, 0))) if n2_p != n2 else b_bnc
    a_bf = a_bnc.astype(jnp.bfloat16)
    b_bf = b.astype(jnp.bfloat16)
    limit = _vmem_limit(2 * (n1 * c * 2 + t * c * 2 + n1 * t * 4))
    out = pl.pallas_call(
        _pairwise_kernel,
        out_shape=jax.ShapeDtypeStruct((B, n1, n2_p), jnp.float32),
        grid_spec=pltpu.PrefetchScalarGridSpec(
            num_scalar_prefetch=0,
            grid=(B, n2_p // t),
            in_specs=[pl.BlockSpec((1, n1, c), lambda bb_, j: (bb_, 0, 0)),
                      pl.BlockSpec((1, t, c), lambda bb_, j: (bb_, j, 0))],
            out_specs=pl.BlockSpec((1, n1, t), lambda bb_, j: (bb_, 0, j)),
        ),
        compiler_params=pltpu.CompilerParams(
            dimension_semantics=("parallel", "parallel"),
            vmem_limit_bytes=limit),
    )(a_bf, b_bf)
    return out[:, :, :n2] if n2_p != n2 else out


# ----------------------------------------------------------------------------
# Plain-JAX glue: per-point bilinear corner indices + weights for
# F.grid_sample (mode='bilinear', padding_mode='zeros', align_corners=False).
# ----------------------------------------------------------------------------
def bilinear_gather_params(pts, H, W):
    """pts: (B, S, 2) in [-1,1]. Returns idx (B, S*4) int32 and wgt (B, S*4) f32."""
    B, S, _ = pts.shape
    gx = pts[..., 0].astype(jnp.float32)
    gy = pts[..., 1].astype(jnp.float32)
    x = (gx + 1.0) * W / 2.0 - 0.5
    y = (gy + 1.0) * H / 2.0 - 0.5
    x0 = jnp.floor(x)
    y0 = jnp.floor(y)
    wx1 = x - x0
    wx0 = 1.0 - wx1
    wy1 = y - y0
    wy0 = 1.0 - wy1

    def corner(yy, xx, wgt):
        valid = (xx >= 0) & (xx < W) & (yy >= 0) & (yy < H)
        xi = jnp.clip(xx, 0, W - 1).astype(jnp.int32)
        yi = jnp.clip(yy, 0, H - 1).astype(jnp.int32)
        return yi * W + xi, jnp.where(valid, wgt, 0.0)

    i00, w00 = corner(y0, x0, wy0 * wx0)
    i01, w01 = corner(y0, x0 + 1.0, wy0 * wx1)
    i10, w10 = corner(y0 + 1.0, x0, wy1 * wx0)
    i11, w11 = corner(y0 + 1.0, x0 + 1.0, wy1 * wx1)
    idx = jnp.stack([i00, i01, i10, i11], axis=-1).reshape(B, S * 4)
    wgt = jnp.stack([w00, w01, w10, w11], axis=-1).reshape(B, S * 4)
    return idx.astype(jnp.int32), wgt.astype(jnp.float32)


# ----------------------------------------------------------------------------
# Trace-time folding of create_mlp(64,1,nl=3) in eval mode (conv-BN chain has
# no intermediate activations, so it is purely affine):
#   sigmoid(w'.x + b') with w' = w0 * s0*w1*s1*w2*s2.
# ----------------------------------------------------------------------------
def fold_mlp(w0, aff):
    s0, b0, w1, s1, b1, w2, s2, b2 = [aff[i] for i in range(8)]
    scale = s0 * w1 * s1 * w2 * s2
    bias = b0 * w1 * s1 * w2 * s2 + b1 * w2 * s2 + b2
    return w0[:, 0] * scale, bias


# ----------------------------------------------------------------------------
# Forward-path compute of MultiResolutionFPNNoMixConf given precomputed
# 64-channel descriptor maps (stand-ins for obtain_descriptors output).
# ----------------------------------------------------------------------------
def forward(feats1, feats2, vPIm1, vPIm2, invPIm1, invPIm2, params):
    B, C, H, W = feats1.shape
    hw = H * W
    S = vPIm1.shape[1]

    rc_w, rc_b = fold_mlp(*params["regress_conf"])
    bc_w, bc_b = fold_mlp(*params["binary_class"])

    # One heads pass over both images (stacked along batch); bc for image 2 is
    # discarded (HBM-bound pass, one extra 1x64 matmul row is free).
    feats_all = jnp.concatenate([feats1, feats2], axis=0)              # (2B,C,H,W)
    heads_all = fused_heads_map(feats_all,
                                jnp.stack([rc_w, bc_w], 0),
                                jnp.stack([rc_b, bc_b], 0)[:, None])   # (2B,2,HW)

    conf_all = heads_all[:, 0:1, :]                                    # (2B,1,HW)
    conf1_map, conf2_map = conf_all[:B], conf_all[B:]
    match1_map = heads_all[:B, 1:2, :]

    # Channel-last augmented map: [feat(64) | conf | zero-pad] -> 128 lanes.
    # TODO(synk): this XLA transpose is one extra HBM round trip per map; it
    # could be fused into the heads kernel with an in-kernel transpose.
    feats_flat = feats_all.reshape(2 * B, C, hw)
    aug = jnp.concatenate([feats_flat, conf_all], axis=1)              # (2B,C+1,HW)
    aug = jnp.transpose(aug, (0, 2, 1))                                # (2B,HW,C+1)
    hw_p = _round_up(hw, 8)
    aug = jnp.pad(aug, ((0, 0), (0, hw_p - hw), (0, CP - (C + 1))))    # (2B,HWp,128)

    # Merge true/neg sample points per image and both images along batch:
    # one gather-sample pallas_call for the whole sampling phase.
    pts = jnp.concatenate(
        [jnp.concatenate([vPIm1, invPIm1], axis=1),
         jnp.concatenate([vPIm2, invPIm2], axis=1)], axis=0)           # (2B,2S,2)
    idx, wgt = bilinear_gather_params(pts, H, W)

    sampled = gather_sample_norm(idx, wgt, aug)                        # (2B,2S,128)

    trueFeats1 = sampled[:B, :S, :C]
    negFeats1 = sampled[:B, S:2 * S, :C]
    trueFeats2 = sampled[B:, :S, :C]
    negFeats2 = sampled[B:, S:2 * S, :C]
    conf1 = sampled[:B, :S, C]
    negconf1 = sampled[:B, S:2 * S, C]
    conf2 = sampled[B:, :S, C]
    negconf2 = sampled[B:, S:2 * S, C]

    # Per perf review: at B*S this small these are XLA-fused elementwise ops;
    # separate pallas_call launches would only add fixed overhead.
    trueMatch = jnp.sum((trueFeats1 - trueFeats2) ** 2, axis=-1)       # (B,S)
    negMatch = jnp.sum((negFeats1 - negFeats2) ** 2, axis=-1)          # (B,S)
    confPos = conf1 * conf2
    confNeg = negconf1 * negconf2

    n1 = min(N1_SLICE, S)
    n2 = min(N2_SLICE, S)
    predMatch = pairwise_dist(trueFeats1[:, :n1, :], negFeats2[:, :n2, :])

    # TODO(synk): HingeLoss / BCELoss / Stats (top1, top5) are external loss
    # modules; the tensors feeding them are returned instead.
    return {
        "trueMatch": trueMatch,
        "negMatch": negMatch,
        "predMatch": predMatch,
        "conf1": conf1,
        "conf2": conf2,
        "confPos": confPos,
        "confNeg": confNeg,
        "conf1Im": conf1_map.reshape(B, 1, H, W),
        "conf2Im": conf2_map.reshape(B, 1, H, W),
        "match1Im": match1_map.reshape(B, 1, H, W),
        # sampled descriptors kept channel-last (B, S, C)
        "trueFeats1": trueFeats1,
        "trueFeats2": trueFeats2,
    }


# ----------------------------------------------------------------------------
# Deterministic parameter init (create_mlp(64, 1, nl=3); BN folded, eval mode).
# ----------------------------------------------------------------------------
def init_mlp_params(key, c_in=C_FEAT):
    ks = jax.random.split(key, 6)
    w0 = 0.1 * jax.random.normal(ks[0], (c_in, 1), jnp.float32)   # Conv2d(64,1,1, bias=False)
    w1 = 1.0 + 0.1 * jax.random.normal(ks[1], (), jnp.float32)    # Conv2d(1,1,1, bias=False)
    w2 = 1.0 + 0.1 * jax.random.normal(ks[2], (), jnp.float32)    # Conv2d(1,1,1, bias=False)

    def bn_fold(k):
        k1, k2, k3, k4 = jax.random.split(k, 4)
        gamma = 1.0 + 0.1 * jax.random.normal(k1, (), jnp.float32)
        beta = 0.1 * jax.random.normal(k2, (), jnp.float32)
        mean = 0.1 * jax.random.normal(k3, (), jnp.float32)
        var = jax.random.uniform(k4, (), jnp.float32, 0.5, 1.5)
        scale = gamma / jnp.sqrt(var + BN_EPS)
        bias = beta - mean * scale
        return scale, bias

    s0, b0 = bn_fold(ks[3])
    s1, b1 = bn_fold(ks[4])
    s2, b2 = bn_fold(ks[5])
    aff = jnp.stack([s0, b0, w1, s1, b1, w2, s2, b2]).astype(jnp.float32)
    return w0, aff


if __name__ == "__main__":
    B, C, H, W, S = 2, C_FEAT, 16, 16, 8

    key = jax.random.PRNGKey(0)
    k_f1, k_f2, k_p1, k_p2, k_n1, k_n2, k_rc, k_bc = jax.random.split(key, 8)

    # Stand-ins for obtain_descriptors() output (smp.Unet backbone is external).
    feats1 = jax.random.normal(k_f1, (B, C, H, W), jnp.float32)
    feats2 = jax.random.normal(k_f2, (B, C, H, W), jnp.float32)
    # Keypoint samplers in [-1, 1] (batch['vPatchesIm*'], batch['invPatchesIm*']).
    vPIm1 = jax.random.uniform(k_p1, (B, S, 2), jnp.float32, -1.0, 1.0)
    vPIm2 = jax.random.uniform(k_p2, (B, S, 2), jnp.float32, -1.0, 1.0)
    invPIm1 = jax.random.uniform(k_n1, (B, S, 2), jnp.float32, -1.0, 1.0)
    invPIm2 = jax.random.uniform(k_n2, (B, S, 2), jnp.float32, -1.0, 1.0)

    params = {
        "regress_conf": init_mlp_params(k_rc),
        "binary_class": init_mlp_params(k_bc),
    }
    # NOTE: fp1L/fp2L/fp1S/fp2S (1x1 convs) are defined in __init__ but never
    # used in the forward pass, so they are omitted here.

    out = jax.jit(functools.partial(forward, params=params))(
        feats1, feats2, vPIm1, vPIm2, invPIm1, invPIm2)
    jax.block_until_ready(out)

    n1 = min(N1_SLICE, S)
    n2 = min(N2_SLICE, S)
    assert out["trueMatch"].shape == (B, S)
    assert out["negMatch"].shape == (B, S)
    assert out["predMatch"].shape == (B, n1, n2)
    assert out["conf1"].shape == (B, S)
    assert out["conf1Im"].shape == (B, 1, H, W)
    assert out["conf2Im"].shape == (B, 1, H, W)
    assert out["match1Im"].shape == (B, 1, H, W)
    assert out["trueFeats1"].shape == (B, S, C)
    print("KERNEL_OK")
</pallas_src>

<mosaic_0001>
module attributes {stable_mosaic.version = 11 : i64} {
  func.func @_heads_kernel(%arg0: i32, %arg1: i32, %arg2: memref<1x64x256xf32, #tpu.memory_space<vmem>>, %arg3: memref<2x64xf32, #tpu.memory_space<vmem>>, %arg4: memref<2x1xf32, #tpu.memory_space<vmem>>, %arg5: memref<1x2x256xf32, #tpu.memory_space<vmem>>) attributes {dimension_semantics = [#tpu.dimension_semantics<parallel>, #tpu.dimension_semantics<parallel>], iteration_bounds = array<i64: 4, 1>, scalar_prefetch = 0 : i64, scratch_operands = 0 : i64, tpu.core_type = #tpu.core_type<tc>, window_params = [{transform_indices = @transform_0, window_bounds = array<i64: 1, 64, 256>}, {pipeline_mode = #tpu.pipeline_mode<synchronous>, transform_indices = @transform_1, window_bounds = array<i64: 2, 64>}, {pipeline_mode = #tpu.pipeline_mode<synchronous>, transform_indices = @transform_2, window_bounds = array<i64: 2, 1>}, {transform_indices = @transform_3, window_bounds = array<i64: 1, 2, 256>}]} {
    %c0 = arith.constant 0 : index
    %c0_0 = arith.constant 0 : index
    %0 = vector.load %arg3[%c0, %c0_0] : memref<2x64xf32, #tpu.memory_space<vmem>>, vector<2x64xf32>
    %c0_1 = arith.constant 0 : index
    %c0_2 = arith.constant 0 : index
    %c0_3 = arith.constant 0 : index
    %1 = vector.load %arg2[%c0_1, %c0_2, %c0_3] : memref<1x64x256xf32, #tpu.memory_space<vmem>>, vector<1x64x256xf32>
    %2 = vector.shape_cast %1 : vector<1x64x256xf32> to vector<64x256xf32>
    %cst = arith.constant dense<0.000000e+00> : vector<2x256xf32>
    %3 = tpu.matmul %0, %2, %cst {dimension_numbers = #tpu.dot_dimension_numbers<[1], [0], [0], [1], [0, 0, 1, 1], [], []>} : vector<2x64xf32>, vector<64x256xf32>, vector<2x256xf32> -> vector<2x256xf32>
    %c0_4 = arith.constant 0 : index
    %c0_5 = arith.constant 0 : index
    %4 = vector.load %arg4[%c0_4, %c0_5] : memref<2x1xf32, #tpu.memory_space<vmem>>, vector<2x1xf32>
    %5 = vector.broadcast %4 : vector<2x1xf32> to vector<2x256xf32>
    %6 = arith.addf %3, %5 : vector<2x256xf32>
    %7 = arith.negf %6 : vector<2x256xf32>
    %8 = math.exp %7 : vector<2x256xf32>
    %cst_6 = arith.constant 1.000000e+00 : f32
    %9 = vector.broadcast %cst_6 : f32 to vector<2x256xf32>
    %10 = arith.addf %9, %8 : vector<2x256xf32>
    %11 = arith.divf %9, %10 : vector<2x256xf32>
    %c0_7 = arith.constant 0 : index
    %c0_8 = arith.constant 0 : index
    %c0_9 = arith.constant 0 : index
    %12 = vector.load %arg5[%c0_7, %c0_8, %c0_9] : memref<1x2x256xf32, #tpu.memory_space<vmem>>, vector<1x2x256xf32>
    %13 = vector.shape_cast %12 : vector<1x2x256xf32> to vector<2x256xf32>
    %14 = vector.shape_cast %11 : vector<2x256xf32> to vector<1x2x256xf32>
    tpu.vector_store %arg5[%c0_7, %c0_8, %c0_9], %14 {strides = array<i32>} : memref<1x2x256xf32, #tpu.memory_space<vmem>>, vector<1x2x256xf32>,
    return
  }
  func.func @transform_0(%arg0: i32, %arg1: i32) -> (i32, i32, i32) {
    %c0_i32 = arith.constant 0 : i32
    %c0_i32_0 = arith.constant 0 : i32
    return %arg0, %c0_i32, %arg1 : i32, i32, i32
  }
  func.func @transform_1(%arg0: i32, %arg1: i32) -> (i32, i32) {
    %c0_i32 = arith.constant 0 : i32
    %c0_i32_0 = arith.constant 0 : i32
    %c0_i32_1 = arith.constant 0 : i32
    return %c0_i32, %c0_i32_0 : i32, i32
  }
  func.func @transform_2(%arg0: i32, %arg1: i32) -> (i32, i32) {
    %c0_i32 = arith.constant 0 : i32
    %c0_i32_0 = arith.constant 0 : i32
    %c0_i32_1 = arith.constant 0 : i32
    return %c0_i32, %c0_i32_0 : i32, i32
  }
  func.func @transform_3(%arg0: i32, %arg1: i32) -> (i32, i32, i32) {
    %c0_i32 = arith.constant 0 : i32
    %c0_i32_0 = arith.constant 0 : i32
    return %arg0, %c0_i32, %arg1 : i32, i32, i32
  }
}

module attributes {stable_mosaic.version = 11 : i64} {
  func.func @_gather_sample_norm_kernel(%arg0: i32, %arg1: i32, %arg2: memref<4x64xi32, #tpu.memory_space<smem>>, %arg3: memref<4x64xf32, #tpu.memory_space<smem>>, %arg4: memref<1x256x128xf32, #tpu.memory_space<vmem>>, %arg5: memref<1x16x128xf32, #tpu.memory_space<vmem>>, %arg6: memref<16x128xf32, #tpu.memory_space<vmem>>) attributes {dimension_semantics = [#tpu.dimension_semantics<parallel>, #tpu.dimension_semantics<parallel>], iteration_bounds = array<i64: 4, 1>, scalar_prefetch = 0 : i64, scratch_operands = 1 : i64, tpu.core_type = #tpu.core_type<tc>, window_params = [{transform_indices = @transform_0, window_bounds = array<i64: 4, 64>}, {transform_indices = @transform_1, window_bounds = array<i64: 4, 64>}, {transform_indices = @transform_2, window_bounds = array<i64: 1, 256, 128>}, {transform_indices = @transform_3, window_bounds = array<i64: 1, 16, 128>}]} {
    %c0_i32 = arith.constant 0 : i32
    %c16_i32 = arith.constant 16 : i32
    %0 = arith.muli %arg1, %c16_i32 : i32
    %1 = arith.addi %0, %c0_i32 : i32
    %c4_i32 = arith.constant 4 : i32
    %2 = arith.muli %1, %c4_i32 : i32
    %3 = arith.index_cast %arg0 : i32 to index
    %4 = arith.index_cast %2 : i32 to index
    %5 = memref.load %arg3[%3, %4] : memref<4x64xf32, #tpu.memory_space<smem>>
    %6 = arith.index_cast %arg0 : i32 to index
    %7 = arith.index_cast %2 : i32 to index
    %8 = memref.load %arg2[%6, %7] : memref<4x64xi32, #tpu.memory_space<smem>>
    %c0 = arith.constant 0 : index
    %9 = arith.index_cast %8 : i32 to index
    %c0_0 = arith.constant 0 : index
    %10 = vector.load %arg4[%c0, %9, %c0_0] : memref<1x256x128xf32, #tpu.memory_space<vmem>>, vector<1x1x128xf32>
    %11 = vector.shape_cast %10 : vector<1x1x128xf32> to vector<1x128xf32>
    %12 = vector.broadcast %5 : f32 to vector<1x128xf32>
    %13 = arith.mulf %12, %11 : vector<1x128xf32>
    %c1_i32 = arith.constant 1 : i32
    %14 = arith.addi %2, %c1_i32 : i32
    %15 = arith.index_cast %arg0 : i32 to index
    %16 = arith.index_cast %14 : i32 to index
    %17 = memref.load %arg3[%15, %16] : memref<4x64xf32, #tpu.memory_space<smem>>
    %c1_i32_1 = arith.constant 1 : i32
    %18 = arith.addi %2, %c1_i32_1 : i32
    %19 = arith.index_cast %arg0 : i32 to index
    %20 = arith.index_cast %18 : i32 to index
    %21 = memref.load %arg2[%19, %20] : memref<4x64xi32, #tpu.memory_space<smem>>
    %c0_2 = arith.constant 0 : index
    %22 = arith.index_cast %21 : i32 to index
    %c0_3 = arith.constant 0 : index
    %23 = vector.load %arg4[%c0_2, %22, %c0_3] : memref<1x256x128xf32, #tpu.memory_space<vmem>>, vector<1x1x128xf32>
    %24 = vector.shape_cast %23 : vector<1x1x128xf32> to vector<1x128xf32>
    %25 = vector.broadcast %17 : f32 to vector<1x128xf32>
    %26 = arith.mulf %25, %24 : vector<1x128xf32>
    %27 = arith.addf %13, %26 : vector<1x128xf32>
    %c2_i32 = arith.constant 2 : i32
    %28 = arith.addi %2, %c2_i32 : i32
    %29 = arith.index_cast %arg0 : i32 to index
    %30 = arith.index_cast %28 : i32 to index
    %31 = memref.load %arg3[%29, %30] : memref<4x64xf32, #tpu.memory_space<smem>>
    %c2_i32_4 = arith.constant 2 : i32
    %32 = arith.addi %2, %c2_i32_4 : i32
    %33 = arith.index_cast %arg0 : i32 to index
    %34 = arith.index_cast %32 : i32 to index
    %35 = memref.load %arg2[%33, %34] : memref<4x64xi32, #tpu.memory_space<smem>>
    %c0_5 = arith.constant 0 : index
    %36 = arith.index_cast %35 : i32 to index
    %c0_6 = arith.constant 0 : index
    %37 = vector.load %arg4[%c0_5, %36, %c0_6] : memref<1x256x128xf32, #tpu.memory_space<vmem>>, vector<1x1x128xf32>
    %38 = vector.shape_cast %37 : vector<1x1x128xf32> to vector<1x128xf32>
    %39 = vector.broadcast %31 : f32 to vector<1x128xf32>
    %40 = arith.mulf %39, %38 : vector<1x128xf32>
    %41 = arith.addf %27, %40 : vector<1x128xf32>
    %c3_i32 = arith.constant 3 : i32
    %42 = arith.addi %2, %c3_i32 : i32
    %43 = arith.index_cast %arg0 : i32 to index
    %44 = arith.index_cast %42 : i32 to index
    %45 = memref.load %arg3[%43, %44] : memref<4x64xf32, #tpu.memory_space<smem>>
    %c3_i32_7 = arith.constant 3 : i32
    %46 = arith.addi %2, %c3_i32_7 : i32
    %47 = arith.index_cast %arg0 : i32 to index
    %48 = arith.index_cast %46 : i32 to index
    %49 = memref.load %arg2[%47, %48] : memref<4x64xi32, #tpu.memory_space<smem>>
    %c0_8 = arith.constant 0 : index
    %50 = arith.index_cast %49 : i32 to index
    %c0_9 = arith.constant 0 : index
    %51 = vector.load %arg4[%c0_8, %50, %c0_9] : memref<1x256x128xf32, #tpu.memory_space<vmem>>, vector<1x1x128xf32>
    %52 = vector.shape_cast %51 : vector<1x1x128xf32> to vector<1x128xf32>
    %53 = vector.broadcast %45 : f32 to vector<1x128xf32>
    %54 = arith.mulf %53, %52 : vector<1x128xf32>
    %55 = arith.addf %41, %54 : vector<1x128xf32>
    %56 = arith.index_cast %c0_i32 : i32 to index
    %c0_10 = arith.constant 0 : index
    %57 = vector.load %arg6[%56, %c0_10] : memref<16x128xf32, #tpu.memory_space<vmem>>, vector<1x128xf32>
    tpu.vector_store %arg6[%56, %c0_10], %55 {strides = array<i32>} : memref<16x128xf32, #tpu.memory_space<vmem>>, vector<1x128xf32>,
    %c1_i32_11 = arith.constant 1 : i32
    %c16_i32_12 = arith.constant 16 : i32
    %58 = arith.muli %arg1, %c16_i32_12 : i32
    %59 = arith.addi %58, %c1_i32_11 : i32
    %c4_i32_13 = arith.constant 4 : i32
    %60 = arith.muli %59, %c4_i32_13 : i32
    %61 = arith.index_cast %arg0 : i32 to index
    %62 = arith.index_cast %60 : i32 to index
    %63 = memref.load %arg3[%61, %62] : memref<4x64xf32, #tpu.memory_space<smem>>
    %64 = arith.index_cast %arg0 : i32 to index
    %65 = arith.index_cast %60 : i32 to index
    %66 = memref.load %arg2[%64, %65] : memref<4x64xi32, #tpu.memory_space<smem>>
    %c0_14 = arith.constant 0 : index
    %67 = arith.index_cast %66 : i32 to index
    %c0_15 = arith.constant 0 : index
    %68 = vector.load %arg4[%c0_14, %67, %c0_15] : memref<1x256x128xf32, #tpu.memory_space<vmem>>, vector<1x1x128xf32>
    %69 = vector.shape_cast %68 : vector<1x1x128xf32> to vector<1x128xf32>
    %70 = vector.broadcast %63 : f32 to vector<1x128xf32>
    %71 = arith.mulf %70, %69 : vector<1x128xf32>
    %c1_i32_16 = arith.constant 1 : i32
    %72 = arith.addi %60, %c1_i32_16 : i32
    %73 = arith.index_cast %arg0 : i32 to index
    %74 = arith.index_cast %72 : i32 to index
    %75 = memref.load %arg3[%73, %74] : memref<4x64xf32, #tpu.memory_space<smem>>
    %c1_i32_17 = arith.constant 1 : i32
    %76 = arith.addi %60, %c1_i32_17 : i32
    %77 = arith.index_cast %arg0 : i32 to index
    %78 = arith.index_cast %76 : i32 to index
    %79 = memref.load %arg2[%77, %78] : memref<4x64xi32, #tpu.memory_space<smem>>
    %c0_18 = arith.constant 0 : index
    %80 = arith.index_cast %79 : i32 to index
    %c0_19 = arith.constant 0 : index
    %81 = vector.load %arg4[%c0_18, %80, %c0_19] : memref<1x256x128xf32, #tpu.memory_space<vmem>>, vector<1x1x128xf32>
    %82 = vector.shape_cast %81 : vector<1x1x128xf32> to vector<1x128xf32>
    %83 = vector.broadcast %75 : f32 to vector<1x128xf32>
    %84 = arith.mulf %83, %82 : vector<1x128xf32>
    %85 = arith.addf %71, %84 : vector<1x128xf32>
    %c2_i32_20 = arith.constant 2 : i32
    %86 = arith.addi %60, %c2_i32_20 : i32
    %87 = arith.index_cast %arg0 : i32 to index
    %88 = arith.index_cast %86 : i32 to index
    %89 = memref.load %arg3[%87, %88] : memref<4x64xf32, #tpu.memory_space<smem>>
    %c2_i32_21 = arith.constant 2 : i32
    %90 = arith.addi %60, %c2_i32_21 : i32
    %91 = arith.index_cast %arg0 : i32 to index
    %92 = arith.index_cast %90 : i32 to index
    %93 = memref.load %arg2[%91, %92] : memref<4x64xi32, #tpu.memory_space<smem>>
    %c0_22 = arith.constant 0 : index
    %94 = arith.index_cast %93 : i32 to index
    %c0_23 = arith.constant 0 : index
    %95 = vector.load %arg4[%c0_22, %94, %c0_23] : memref<1x256x128xf32, #tpu.memory_space<vmem>>, vector<1x1x128xf32>
    %96 = vector.shape_cast %95 : vector<1x1x128xf32> to vector<1x128xf32>
    %97 = vector.broadcast %89 : f32 to vector<1x128xf32>
    %98 = arith.mulf %97, %96 : vector<1x128xf32>
    %99 = arith.addf %85, %98 : vector<1x128xf32>
    %c3_i32_24 = arith.constant 3 : i32
    %100 = arith.addi %60, %c3_i32_24 : i32
    %101 = arith.index_cast %arg0 : i32 to index
    %102 = arith.index_cast %100 : i32 to index
    %103 = memref.load %arg3[%101, %102] : memref<4x64xf32, #tpu.memory_space<smem>>
    %c3_i32_25 = arith.constant 3 : i32
    %104 = arith.addi %60, %c3_i32_25 : i32
    %105 = arith.index_cast %arg0 : i32 to index
    %106 = arith.index_cast %104 : i32 to index
    %107 = memref.load %arg2[%105, %106] : memref<4x64xi32, #tpu.memory_space<smem>>
    %c0_26 = arith.constant 0 : index
    %108 = arith.index_cast %107 : i32 to index
    %c0_27 = arith.constant 0 : index
    %109 = vector.load %arg4[%c0_26, %108, %c0_27] : memref<1x256x128xf32, #tpu.memory_space<vmem>>, vector<1x1x128xf32>
    %110 = vector.shape_cast %109 : vector<1x1x128xf32> to vector<1x128xf32>
    %111 = vector.broadcast %103 : f32 to vector<1x128xf32>
    %112 = arith.mulf %111, %110 : vector<1x128xf32>
    %113 = arith.addf %99, %112 : vector<1x128xf32>
    %114 = arith.index_cast %c1_i32_11 : i32 to index
    %c0_28 = arith.constant 0 : index
    %115 = vector.load %arg6[%114, %c0_28] : memref<16x128xf32, #tpu.memory_space<vmem>>, vector<1x128xf32>
    tpu.vector_store %arg6[%114, %c0_28], %113 {strides = array<i32>} : memref<16x128xf32, #tpu.memory_space<vmem>>, vector<1x128xf32>,
    %c2_i32_29 = arith.constant 2 : i32
    %c16_i32_30 = arith.constant 16 : i32
    %116 = arith.muli %arg1, %c16_i32_30 : i32
    %117 = arith.addi %116, %c2_i32_29 : i32
    %c4_i32_31 = arith.constant 4 : i32
    %118 = arith.muli %117, %c4_i32_31 : i32
    %119 = arith.index_cast %arg0 : i32 to index
    %120 = arith.index_cast %118 : i32 to index
    %121 = memref.load %arg3[%119, %120] : memref<4x64xf32, #tpu.memory_space<smem>>
    %122 = arith.index_cast %arg0 : i32 to index
    %123 = arith.index_cast %118 : i32 to index
    %124 = memref.load %arg2[%122, %123] : memref<4x64xi32, #tpu.memory_space<smem>>
    %c0_32 = arith.constant 0 : index
    %125 = arith.index_cast %124 : i32 to index
    %c0_33 = arith.constant 0 : index
    %126 = vector.load %arg4[%c0_32, %125, %c0_33] : memref<1x256x128xf32, #tpu.memory_space<vmem>>, vector<1x1x128xf32>
    %127 = vector.shape_cast %126 : vector<1x1x128xf32> to vector<1x128xf32>
    %128 = vector.broadcast %121 : f32 to vector<1x128xf32>
    %129 = arith.mulf %128, %127 : vector<1x128xf32>
    %c1_i32_34 = arith.constant 1 : i32
    %130 = arith.addi %118, %c1_i32_34 : i32
    %131 = arith.index_cast %arg0 : i32 to index
    %132 = arith.index_cast %130 : i32 to index
    %133 = memref.load %arg3[%131, %132] : memref<4x64xf32, #tpu.memory_space<smem>>
    %c1_i32_35 = arith.constant 1 : i32
    %134 = arith.addi %118, %c1_i32_35 : i32
    %135 = arith.index_cast %arg0 : i32 to index
    %136 = arith.index_cast %134 : i32 to index
    %137 = memref.load %arg2[%135, %136] : memref<4x64xi32, #tpu.memory_space<smem>>
    %c0_36 = arith.constant 0 : index
    %138 = arith.index_cast %137 : i32 to index
    %c0_37 = arith.constant 0 : index
    %139 = vector.load %arg4[%c0_36, %138, %c0_37] : memref<1x256x128xf32, #tpu.memory_space<vmem>>, vector<1x1x128xf32>
    %140 = vector.shape_cast %139 : vector<1x1x128xf32> to vector<1x128xf32>
    %141 = vector.broadcast %133 : f32 to vector<1x128xf32>
    %142 = arith.mulf %141, %140 : vector<1x128xf32>
    %143 = arith.addf %129, %142 : vector<1x128xf32>
    %c2_i32_38 = arith.constant 2 : i32
    %144 = arith.addi %118, %c2_i32_38 : i32
    %145 = arith.index_cast %arg0 : i32 to index
    %146 = arith.index_cast %144 : i32 to index
    %147 = memref.load %arg3[%145, %146] : memref<4x64xf32, #tpu.memory_space<smem>>
    %c2_i32_39 = arith.constant 2 : i32
    %148 = arith.addi %118, %c2_i32_39 : i32
    %149 = arith.index_cast %arg0 : i32 to index
    %150 = arith.index_cast %148 : i32 to index
    %151 = memref.load %arg2[%149, %150] : memref<4x64xi32, #tpu.memory_space<smem>>
    %c0_40 = arith.constant 0 : index
    %152 = arith.index_cast %151 : i32 to index
    %c0_41 = arith.constant 0 : index
    %153 = vector.load %arg4[%c0_40, %152, %c0_41] : memref<1x256x128xf32, #tpu.memory_space<vmem>>, vector<1x1x128xf32>
    %154 = vector.shape_cast %153 : vector<1x1x128xf32> to vector<1x128xf32>
    %155 = vector.broadcast %147 : f32 to vector<1x128xf32>
    %156 = arith.mulf %155, %154 : vector<1x128xf32>
    %157 = arith.addf %143, %156 : vector<1x128xf32>
    %c3_i32_42 = arith.constant 3 : i32
    %158 = arith.addi %118, %c3_i32_42 : i32
    %159 = arith.index_cast %arg0 : i32 to index
    %160 = arith.index_cast %158 : i32 to index
    %161 = memref.load %arg3[%159, %160] : memref<4x64xf32, #tpu.memory_space<smem>>
    %c3_i32_43 = arith.constant 3 : i32
    %162 = arith.addi %118, %c3_i32_43 : i32
    %163 = arith.index_cast %arg0 : i32 to index
    %164 = arith.index_cast %162 : i32 to index
    %165 = memref.load %arg2[%163, %164] : memref<4x64xi32, #tpu.memory_space<smem>>
    %c0_44 = arith.constant 0 : index
    %166 = arith.index_cast %165 : i32 to index
    %c0_45 = arith.constant 0 : index
    %167 = vector.load %arg4[%c0_44, %166, %c0_45] : memref<1x256x128xf32, #tpu.memory_space<vmem>>, vector<1x1x128xf32>
    %168 = vector.shape_cast %167 : vector<1x1x128xf32> to vector<1x128xf32>
    %169 = vector.broadcast %161 : f32 to vector<1x128xf32>
    %170 = arith.mulf %169, %168 : vector<1x128xf32>
    %171 = arith.addf %157, %170 : vector<1x128xf32>
    %172 = arith.index_cast %c2_i32_29 : i32 to index
    %c0_46 = arith.constant 0 : index
    %173 = vector.load %arg6[%172, %c0_46] : memref<16x128xf32, #tpu.memory_space<vmem>>, vector<1x128xf32>
    tpu.vector_store %arg6[%172, %c0_46], %171 {strides = array<i32>} : memref<16x128xf32, #tpu.memory_space<vmem>>, vector<1x128xf32>,
    %c3_i32_47 = arith.constant 3 : i32
    %c16_i32_48 = arith.constant 16 : i32
    %174 = arith.muli %arg1, %c16_i32_48 : i32
    %175 = arith.addi %174, %c3_i32_47 : i32
    %c4_i32_49 = arith.constant 4 : i32
    %176 = arith.muli %175, %c4_i32_49 : i32
    %177 = arith.index_cast %arg0 : i32 to index
    %178 = arith.index_cast %176 : i32 to index
    %179 = memref.load %arg3[%177, %178] : memref<4x64xf32, #tpu.memory_space<smem>>
    %180 = arith.index_cast %arg0 : i32 to index
    %181 = arith.index_cast %176 : i32 to index
    %182 = memref.load %arg2[%180, %181] : memref<4x64xi32, #tpu.memory_space<smem>>
    %c0_50 = arith.constant 0 : index
    %183 = arith.index_cast %182 : i32 to index
    %c0_51 = arith.constant 0 : index
    %184 = vector.load %arg4[%c0_50, %183, %c0_51] : memref<1x256x128xf32, #tpu.memory_space<vmem>>, vector<1x1x128xf32>
    %185 = vector.shape_cast %184 : vector<1x1x128xf32> to vector<1x128xf32>
    %186 = vector.broadcast %179 : f32 to vector<1x128xf32>
    %187 = arith.mulf %186, %185 : vector<1x128xf32>
    %c1_i32_52 = arith.constant 1 : i32
    %188 = arith.addi %176, %c1_i32_52 : i32
    %189 = arith.index_cast %arg0 : i32 to index
    %190 = arith.index_cast %188 : i32 to index
    %191 = memref.load %arg3[%189, %190] : memref<4x64xf32, #tpu.memory_space<smem>>
    %c1_i32_53 = arith.constant 1 : i32
    %192 = arith.addi %176, %c1_i32_53 : i32
    %193 = arith.index_cast %arg0 : i32 to index
    %194 = arith.index_cast %192 : i32 to index
    %195 = memref.load %arg2[%193, %194] : memref<4x64xi32, #tpu.memory_space<smem>>
    %c0_54 = arith.constant 0 : index
    %196 = arith.index_cast %195 : i32 to index
    %c0_55 = arith.constant 0 : index
    %197 = vector.load %arg4[%c0_54, %196, %c0_55] : memref<1x256x128xf32, #tpu.memory_space<vmem>>, vector<1x1x128xf32>
    %198 = vector.shape_cast %197 : vector<1x1x128xf32> to vector<1x128xf32>
    %199 = vector.broadcast %191 : f32 to vector<1x128xf32>
    %200 = arith.mulf %199, %198 : vector<1x128xf32>
    %201 = arith.addf %187, %200 : vector<1x128xf32>
    %c2_i32_56 = arith.constant 2 : i32
    %202 = arith.addi %176, %c2_i32_56 : i32
    %203 = arith.index_cast %arg0 : i32 to index
    %204 = arith.index_cast %202 : i32 to index
    %205 = memref.load %arg3[%203, %204] : memref<4x64xf32, #tpu.memory_space<smem>>
    %c2_i32_57 = arith.constant 2 : i32
    %206 = arith.addi %176, %c2_i32_57 : i32
    %207 = arith.index_cast %arg0 : i32 to index
    %208 = arith.index_cast %206 : i32 to index
    %209 = memref.load %arg2[%207, %208] : memref<4x64xi32, #tpu.memory_space<smem>>
    %c0_58 = arith.constant 0 : index
    %210 = arith.index_cast %209 : i32 to index
    %c0_59 = arith.constant 0 : index
    %211 = vector.load %arg4[%c0_58, %210, %c0_59] : memref<1x256x128xf32, #tpu.memory_space<vmem>>, vector<1x1x128xf32>
    %212 = vector.shape_cast %211 : vector<1x1x128xf32> to vector<1x128xf32>
    %213 = vector.broadcast %205 : f32 to vector<1x128xf32>
    %214 = arith.mulf %213, %212 : vector<1x128xf32>
    %215 = arith.addf %201, %214 : vector<1x128xf32>
    %c3_i32_60 = arith.constant 3 : i32
    %216 = arith.addi %176, %c3_i32_60 : i32
    %217 = arith.index_cast %arg0 : i32 to index
    %218 = arith.index_cast %216 : i32 to index
    %219 = memref.load %arg3[%217, %218] : memref<4x64xf32, #tpu.memory_space<smem>>
    %c3_i32_61 = arith.constant 3 : i32
    %220 = arith.addi %176, %c3_i32_61 : i32
    %221 = arith.index_cast %arg0 : i32 to index
    %222 = arith.index_cast %220 : i32 to index
    %223 = memref.load %arg2[%221, %222] : memref<4x64xi32, #tpu.memory_space<smem>>
    %c0_62 = arith.constant 0 : index
    %224 = arith.index_cast %223 : i32 to index
    %c0_63 = arith.constant 0 : index
    %225 = vector.load %arg4[%c0_62, %224, %c0_63] : memref<1x256x128xf32, #tpu.memory_space<vmem>>, vector<1x1x128xf32>
    %226 = vector.shape_cast %225 : vector<1x1x128xf32> to vector<1x128xf32>
    %227 = vector.broadcast %219 : f32 to vector<1x128xf32>
    %228 = arith.mulf %227, %226 : vector<1x128xf32>
    %229 = arith.addf %215, %228 : vector<1x128xf32>
    %230 = arith.index_cast %c3_i32_47 : i32 to index
    %c0_64 = arith.constant 0 : index
    %231 = vector.load %arg6[%230, %c0_64] : memref<16x128xf32, #tpu.memory_space<vmem>>, vector<1x128xf32>
    tpu.vector_store %arg6[%230, %c0_64], %229 {strides = array<i32>} : memref<16x128xf32, #tpu.memory_space<vmem>>, vector<1x128xf32>,
    %c4_i32_65 = arith.constant 4 : i32
    %c16_i32_66 = arith.constant 16 : i32
    %232 = arith.muli %arg1, %c16_i32_66 : i32
    %233 = arith.addi %232, %c4_i32_65 : i32
    %c4_i32_67 = arith.constant 4 : i32
    %234 = arith.muli %233, %c4_i32_67 : i32
    %235 = arith.index_cast %arg0 : i32 to index
    %236 = arith.index_cast %234 : i32 to index
    %237 = memref.load %arg3[%235, %236] : memref<4x64xf32, #tpu.memory_space<smem>>
    %238 = arith.index_cast %arg0 : i32 to index
    %239 = arith.index_cast %234 : i32 to index
    %240 = memref.load %arg2[%238, %239] : memref<4x64xi32, #tpu.memory_space<smem>>
    %c0_68 = arith.constant 0 : index
    %241 = arith.index_cast %240 : i32 to index
    %c0_69 = arith.constant 0 : index
    %242 = vector.load %arg4[%c0_68, %241, %c0_69] : memref<1x256x128xf32, #tpu.memory_space<vmem>>, vector<1x1x128xf32>
    %243 = vector.shape_cast %242 : vector<1x1x128xf32> to vector<1x128xf32>
    %244 = vector.broadcast %237 : f32 to vector<1x128xf32>
    %245 = arith.mulf %244, %243 : vector<1x128xf32>
    %c1_i32_70 = arith.constant 1 : i32
    %246 = arith.addi %234, %c1_i32_70 : i32
    %247 = arith.index_cast %arg0 : i32 to index
    %248 = arith.index_cast %246 : i32 to index
    %249 = memref.load %arg3[%247, %248] : memref<4x64xf32, #tpu.memory_space<smem>>
    %c1_i32_71 = arith.constant 1 : i32
    %250 = arith.addi %234, %c1_i32_71 : i32
    %251 = arith.index_cast %arg0 : i32 to index
    %252 = arith.index_cast %250 : i32 to index
    %253 = memref.load %arg2[%251, %252] : memref<4x64xi32, #tpu.memory_space<smem>>
    %c0_72 = arith.constant 0 : index
    %254 = arith.index_cast %253 : i32 to index
    %c0_73 = arith.constant 0 : index
    %255 = vector.load %arg4[%c0_72, %254, %c0_73] : memref<1x256x128xf32, #tpu.memory_space<vmem>>, vector<1x1x128xf32>
    %256 = vector.shape_cast %255 : vector<1x1x128xf32> to vector<1x128xf32>
    %257 = vector.broadcast %249 : f32 to vector<1x128xf32>
    %258 = arith.mulf %257, %256 : vector<1x128xf32>
    %259 = arith.addf %245, %258 : vector<1x128xf32>
    %c2_i32_74 = arith.constant 2 : i32
    %260 = arith.addi %234, %c2_i32_74 : i32
    %261 = arith.index_cast %arg0 : i32 to index
    %262 = arith.index_cast %260 : i32 to index
    %263 = memref.load %arg3[%261, %262] : memref<4x64xf32, #tpu.memory_space<smem>>
    %c2_i32_75 = arith.constant 2 : i32
    %264 = arith.addi %234, %c2_i32_75 : i32
    %265 = arith.index_cast %arg0 : i32 to index
    %266 = arith.index_cast %264 : i32 to index
    %267 = memref.load %arg2[%265, %266] : memref<4x64xi32, #tpu.memory_space<smem>>
    %c0_76 = arith.constant 0 : index
    %268 = arith.index_cast %267 : i32 to index
    %c0_77 = arith.constant 0 : index
    %269 = vector.load %arg4[%c0_76, %268, %c0_77] : memref<1x256x128xf32, #tpu.memory_space<vmem>>, vector<1x1x128xf32>
    %270 = vector.shape_cast %269 : vector<1x1x128xf32> to vector<1x128xf32>
    %271 = vector.broadcast %263 : f32 to vector<1x128xf32>
    %272 = arith.mulf %271, %270 : vector<1x128xf32>
    %273 = arith.addf %259, %272 : vector<1x128xf32>
    %c3_i32_78 = arith.constant 3 : i32
    %274 = arith.addi %234, %c3_i32_78 : i32
    %275 = arith.index_cast %arg0 : i32 to index
    %276 = arith.index_cast %274 : i32 to index
    %277 = memref.load %arg3[%275, %276] : memref<4x64xf32, #tpu.memory_space<smem>>
    %c3_i32_79 = arith.constant 3 : i32
    %278 = arith.addi %234, %c3_i32_79 : i32
    %279 = arith.index_cast %arg0 : i32 to index
    %280 = arith.index_cast %278 : i32 to index
    %281 = memref.load %arg2[%279, %280] : memref<4x64xi32, #tpu.memory_space<smem>>
    %c0_80 = arith.constant 0 : index
    %282 = arith.index_cast %281 : i32 to index
    %c0_81 = arith.constant 0 : index
    %283 = vector.load %arg4[%c0_80, %282, %c0_81] : memref<1x256x128xf32, #tpu.memory_space<vmem>>, vector<1x1x128xf32>
    %284 = vector.shape_cast %283 : vector<1x1x128xf32> to vector<1x128xf32>
    %285 = vector.broadcast %277 : f32 to vector<1x128xf32>
    %286 = arith.mulf %285, %284 : vector<1x128xf32>
    %287 = arith.addf %273, %286 : vector<1x128xf32>
    %288 = arith.index_cast %c4_i32_65 : i32 to index
    %c0_82 = arith.constant 0 : index
    %289 = vector.load %arg6[%288, %c0_82] : memref<16x128xf32, #tpu.memory_space<vmem>>, vector<1x128xf32>
    tpu.vector_store %arg6[%288, %c0_82], %287 {strides = array<i32>} : memref<16x128xf32, #tpu.memory_space<vmem>>, vector<1x128xf32>,
    %c5_i32 = arith.constant 5 : i32
    %c16_i32_83 = arith.constant 16 : i32
    %290 = arith.muli %arg1, %c16_i32_83 : i32
    %291 = arith.addi %290, %c5_i32 : i32
    %c4_i32_84 = arith.constant 4 : i32
    %292 = arith.muli %291, %c4_i32_84 : i32
    %293 = arith.index_cast %arg0 : i32 to index
    %294 = arith.index_cast %292 : i32 to index
    %295 = memref.load %arg3[%293, %294] : memref<4x64xf32, #tpu.memory_space<smem>>
    %296 = arith.index_cast %arg0 : i32 to index
    %297 = arith.index_cast %292 : i32 to index
    %298 = memref.load %arg2[%296, %297] : memref<4x64xi32, #tpu.memory_space<smem>>
    %c0_85 = arith.constant 0 : index
    %299 = arith.index_cast %298 : i32 to index
    %c0_86 = arith.constant 0 : index
    %300 = vector.load %arg4[%c0_85, %299, %c0_86] : memref<1x256x128xf32, #tpu.memory_space<vmem>>, vector<1x1x128xf32>
    %301 = vector.shape_cast %300 : vector<1x1x128xf32> to vector<1x128xf32>
    %302 = vector.broadcast %295 : f32 to vector<1x128xf32>
    %303 = arith.mulf %302, %301 : vector<1x128xf32>
    %c1_i32_87 = arith.constant 1 : i32
    %304 = arith.addi %292, %c1_i32_87 : i32
    %305 = arith.index_cast %arg0 : i32 to index
    %306 = arith.index_cast %304 : i32 to index
    %307 = memref.load %arg3[%305, %306] : memref<4x64xf32, #tpu.memory_space<smem>>
    %c1_i32_88 = arith.constant 1 : i32
    %308 = arith.addi %292, %c1_i32_88 : i32
    %309 = arith.index_cast %arg0 : i32 to index
    %310 = arith.index_cast %308 : i32 to index
    %311 = memref.load %arg2[%309, %310] : memref<4x64xi32, #tpu.memory_space<smem>>
    %c0_89 = arith.constant 0 : index
    %312 = arith.index_cast %311 : i32 to index
    %c0_90 = arith.constant 0 : index
    %313 = vector.load %arg4[%c0_89, %312, %c0_90] : memref<1x256x128xf32, #tpu.memory_space<vmem>>, vector<1x1x128xf32>
    %314 = vector.shape_cast %313 : vector<1x1x128xf32> to vector<1x128xf32>
    %315 = vector.broadcast %307 : f32 to vector<1x128xf32>
    %316 = arith.mulf %315, %314 : vector<1x128xf32>
    %317 = arith.addf %303, %316 : vector<1x128xf32>
    %c2_i32_91 = arith.constant 2 : i32
    %318 = arith.addi %292, %c2_i32_91 : i32
    %319 = arith.index_cast %arg0 : i32 to index
    %320 = arith.index_cast %318 : i32 to index
    %321 = memref.load %arg3[%319, %320] : memref<4x64xf32, #tpu.memory_space<smem>>
    %c2_i32_92 = arith.constant 2 : i32
    %322 = arith.addi %292, %c2_i32_92 : i32
    %323 = arith.index_cast %arg0 : i32 to index
    %324 = arith.index_cast %322 : i32 to index
    %325 = memref.load %arg2[%323, %324] : memref<4x64xi32, #tpu.memory_space<smem>>
    %c0_93 = arith.constant 0 : index
    %326 = arith.index_cast %325 : i32 to index
    %c0_94 = arith.constant 0 : index
    %327 = vector.load %arg4[%c0_93, %326, %c0_94] : memref<1x256x128xf32, #tpu.memory_space<vmem>>, vector<1x1x128xf32>
    %328 = vector.shape_cast %327 : vector<1x1x128xf32> to vector<1x128xf32>
    %329 = vector.broadcast %321 : f32 to vector<1x128xf32>
    %330 = arith.mulf %329, %328 : vector<1x128xf32>
    %331 = arith.addf %317, %330 : vector<1x128xf32>
    %c3_i32_95 = arith.constant 3 : i32
    %332 = arith.addi %292, %c3_i32_95 : i32
    %333 = arith.index_cast %arg0 : i32 to index
    %334 = arith.index_cast %332 : i32 to index
    %335 = memref.load %arg3[%333, %334] : memref<4x64xf32, #tpu.memory_space<smem>>
    %c3_i32_96 = arith.constant 3 : i32
    %336 = arith.addi %292, %c3_i32_96 : i32
    %337 = arith.index_cast %arg0 : i32 to index
    %338 = arith.index_cast %336 : i32 to index
    %339 = memref.load %arg2[%337, %338] : memref<4x64xi32, #tpu.memory_space<smem>>
    %c0_97 = arith.constant 0 : index
    %340 = arith.index_cast %339 : i32 to index
    %c0_98 = arith.constant 0 : index
    %341 = vector.load %arg4[%c0_97, %340, %c0_98] : memref<1x256x128xf32, #tpu.memory_space<vmem>>, vector<1x1x128xf32>
    %342 = vector.shape_cast %341 : vector<1x1x128xf32> to vector<1x128xf32>
    %343 = vector.broadcast %335 : f32 to vector<1x128xf32>
    %344 = arith.mulf %343, %342 : vector<1x128xf32>
    %345 = arith.addf %331, %344 : vector<1x128xf32>
    %346 = arith.index_cast %c5_i32 : i32 to index
    %c0_99 = arith.constant 0 : index
    %347 = vector.load %arg6[%346, %c0_99] : memref<16x128xf32, #tpu.memory_space<vmem>>, vector<1x128xf32>
    tpu.vector_store %arg6[%346, %c0_99], %345 {strides = array<i32>} : memref<16x128xf32, #tpu.memory_space<vmem>>, vector<1x128xf32>,
    %c6_i32 = arith.constant 6 : i32
    %c16_i32_100 = arith.constant 16 : i32
    %348 = arith.muli %arg1, %c16_i32_100 : i32
    %349 = arith.addi %348, %c6_i32 : i32
    %c4_i32_101 = arith.constant 4 : i32
    %350 = arith.muli %349, %c4_i32_101 : i32
    %351 = arith.index_cast %arg0 : i32 to index
    %352 = arith.index_cast %350 : i32 to index
    %353 = memref.load %arg3[%351, %352] : memref<4x64xf32, #tpu.memory_space<smem>>
    %354 = arith.index_cast %arg0 : i32 to index
    %355 = arith.index_cast %350 : i32 to index
    %356 = memref.load %arg2[%354, %355] : memref<4x64xi32, #tpu.memory_space<smem>>
    %c0_102 = arith.constant 0 : index
    %357 = arith.index_cast %356 : i32 to index
    %c0_103 = arith.constant 0 : index
    %358 = vector.load %arg4[%c0_102, %357, %c0_103] : memref<1x256x128xf32, #tpu.memory_space<vmem>>, vector<1x1x128xf32>
    %359 = vector.shape_cast %358 : vector<1x1x128xf32> to vector<1x128xf32>
    %360 = vector.broadcast %353 : f32 to vector<1x128xf32>
    %361 = arith.mulf %360, %359 : vector<1x128xf32>
    %c1_i32_104 = arith.constant 1 : i32
    %362 = arith.addi %350, %c1_i32_104 : i32
    %363 = arith.index_cast %arg0 : i32 to index
    %364 = arith.index_cast %362 : i32 to index
    %365 = memref.load %arg3[%363, %364] : memref<4x64xf32, #tpu.memory_space<smem>>
    %c1_i32_105 = arith.constant 1 : i32
    %366 = arith.addi %350, %c1_i32_105 : i32
    %367 = arith.index_cast %arg0 : i32 to index
    %368 = arith.index_cast %366 : i32 to index
    %369 = memref.load %arg2[%367, %368] : memref<4x64xi32, #tpu.memory_space<smem>>
    %c0_106 = arith.constant 0 : index
    %370 = arith.index_cast %369 : i32 to index
    %c0_107 = arith.constant 0 : index
    %371 = vector.load %arg4[%c0_106, %370, %c0_107] : memref<1x256x128xf32, #tpu.memory_space<vmem>>, vector<1x1x128xf32>
    %372 = vector.shape_cast %371 : vector<1x1x128xf32> to vector<1x128xf32>
    %373 = vector.broadcast %365 : f32 to vector<1x128xf32>
    %374 = arith.mulf %373, %372 : vector<1x128xf32>
    %375 = arith.addf %361, %374 : vector<1x128xf32>
    %c2_i32_108 = arith.constant 2 : i32
    %376 = arith.addi %350, %c2_i32_108 : i32
    %377 = arith.index_cast %arg0 : i32 to index
    %378 = arith.index_cast %376 : i32 to index
    %379 = memref.load %arg3[%377, %378] : memref<4x64xf32, #tpu.memory_space<smem>>
    %c2_i32_109 = arith.constant 2 : i32
    %380 = arith.addi %350, %c2_i32_109 : i32
    %381 = arith.index_cast %arg0 : i32 to index
    %382 = arith.index_cast %380 : i32 to index
    %383 = memref.load %arg2[%381, %382] : memref<4x64xi32, #tpu.memory_space<smem>>
    %c0_110 = arith.constant 0 : index
    %384 = arith.index_cast %383 : i32 to index
    %c0_111 = arith.constant 0 : index
    %385 = vector.load %arg4[%c0_110, %384, %c0_111] : memref<1x256x128xf32, #tpu.memory_space<vmem>>, vector<1x1x128xf32>
    %386 = vector.shape_cast %385 : vector<1x1x128xf32> to vector<1x128xf32>
    %387 = vector.broadcast %379 : f32 to vector<1x128xf32>
    %388 = arith.mulf %387, %386 : vector<1x128xf32>
    %389 = arith.addf %375, %388 : vector<1x128xf32>
    %c3_i32_112 = arith.constant 3 : i32
    %390 = arith.addi %350, %c3_i32_112 : i32
    %391 = arith.index_cast %arg0 : i32 to index
    %392 = arith.index_cast %390 : i32 to index
    %393 = memref.load %arg3[%391, %392] : memref<4x64xf32, #tpu.memory_space<smem>>
    %c3_i32_113 = arith.constant 3 : i32
    %394 = arith.addi %350, %c3_i32_113 : i32
    %395 = arith.index_cast %arg0 : i32 to index
    %396 = arith.index_cast %394 : i32 to index
    %397 = memref.load %arg2[%395, %396] : memref<4x64xi32, #tpu.memory_space<smem>>
    %c0_114 = arith.constant 0 : index
    %398 = arith.index_cast %397 : i32 to index
    %c0_115 = arith.constant 0 : index
    %399 = vector.load %arg4[%c0_114, %398, %c0_115] : memref<1x256x128xf32, #tpu.memory_space<vmem>>, vector<1x1x128xf32>
    %400 = vector.shape_cast %399 : vector<1x1x128xf32> to vector<1x128xf32>
    %401 = vector.broadcast %393 : f32 to vector<1x128xf32>
    %402 = arith.mulf %401, %400 : vector<1x128xf32>
    %403 = arith.addf %389, %402 : vector<1x128xf32>
    %404 = arith.index_cast %c6_i32 : i32 to index
    %c0_116 = arith.constant 0 : index
    %405 = vector.load %arg6[%404, %c0_116] : memref<16x128xf32, #tpu.memory_space<vmem>>, vector<1x128xf32>
    tpu.vector_store %arg6[%404, %c0_116], %403 {strides = array<i32>} : memref<16x128xf32, #tpu.memory_space<vmem>>, vector<1x128xf32>,
    %c7_i32 = arith.constant 7 : i32
    %c16_i32_117 = arith.constant 16 : i32
    %406 = arith.muli %arg1, %c16_i32_117 : i32
    %407 = arith.addi %406, %c7_i32 : i32
    %c4_i32_118 = arith.constant 4 : i32
    %408 = arith.muli %407, %c4_i32_118 : i32
    %409 = arith.index_cast %arg0 : i32 to index
    %410 = arith.index_cast %408 : i32 to index
    %411 = memref.load %arg3[%409, %410] : memref<4x64xf32, #tpu.memory_space<smem>>
    %412 = arith.index_cast %arg0 : i32 to index
    %413 = arith.index_cast %408 : i32 to index
    %414 = memref.load %arg2[%412, %413] : memref<4x64xi32, #tpu.memory_space<smem>>
    %c0_119 = arith.constant 0 : index
    %415 = arith.index_cast %414 : i32 to index
    %c0_120 = arith.constant 0 : index
    %416 = vector.load %arg4[%c0_119, %415, %c0_120] : memref<1x256x128xf32, #tpu.memory_space<vmem>>, vector<1x1x128xf32>
    %417 = vector.shape_cast %416 : vector<1x1x128xf32> to vector<1x128xf32>
    %418 = vector.broadcast %411 : f32 to vector<1x128xf32>
    %419 = arith.mulf %418, %417 : vector<1x128xf32>
    %c1_i32_121 = arith.constant 1 : i32
    %420 = arith.addi %408, %c1_i32_121 : i32
    %421 = arith.index_cast %arg0 : i32 to index
    %422 = arith.index_cast %420 : i32 to index
    %423 = memref.load %arg3[%421, %422] : memref<4x64xf32, #tpu.memory_space<smem>>
    %c1_i32_122 = arith.constant 1 : i32
    %424 = arith.addi %408, %c1_i32_122 : i32
    %425 = arith.index_cast %arg0 : i32 to index
    %426 = arith.index_cast %424 : i32 to index
    %427 = memref.load %arg2[%425, %426] : memref<4x64xi32, #tpu.memory_space<smem>>
    %c0_123 = arith.constant 0 : index
    %428 = arith.index_cast %427 : i32 to index
    %c0_124 = arith.constant 0 : index
    %429 = vector.load %arg4[%c0_123, %428, %c0_124] : memref<1x256x128xf32, #tpu.memory_space<vmem>>, vector<1x1x128xf32>
    %430 = vector.shape_cast %429 : vector<1x1x128xf32> to vector<1x128xf32>
    %431 = vector.broadcast %423 : f32 to vector<1x128xf32>
    %432 = arith.mulf %431, %430 : vector<1x128xf32>
    %433 = arith.addf %419, %432 : vector<1x128xf32>
    %c2_i32_125 = arith.constant 2 : i32
    %434 = arith.addi %408, %c2_i32_125 : i32
    %435 = arith.index_cast %arg0 : i32 to index
    %436 = arith.index_cast %434 : i32 to index
    %437 = memref.load %arg3[%435, %436] : memref<4x64xf32, #tpu.memory_space<smem>>
    %c2_i32_126 = arith.constant 2 : i32
    %438 = arith.addi %408, %c2_i32_126 : i32
    %439 = arith.index_cast %arg0 : i32 to index
    %440 = arith.index_cast %438 : i32 to index
    %441 = memref.load %arg2[%439, %440] : memref<4x64xi32, #tpu.memory_space<smem>>
    %c0_127 = arith.constant 0 : index
    %442 = arith.index_cast %441 : i32 to index
    %c0_128 = arith.constant 0 : index
    %443 = vector.load %arg4[%c0_127, %442, %c0_128] : memref<1x256x128xf32, #tpu.memory_space<vmem>>, vector<1x1x128xf32>
    %444 = vector.shape_cast %443 : vector<1x1x128xf32> to vector<1x128xf32>
    %445 = vector.broadcast %437 : f32 to vector<1x128xf32>
    %446 = arith.mulf %445, %444 : vector<1x128xf32>
    %447 = arith.addf %433, %446 : vector<1x128xf32>
    %c3_i32_129 = arith.constant 3 : i32
    %448 = arith.addi %408, %c3_i32_129 : i32
    %449 = arith.index_cast %arg0 : i32 to index
    %450 = arith.index_cast %448 : i32 to index
    %451 = memref.load %arg3[%449, %450] : memref<4x64xf32, #tpu.memory_space<smem>>
    %c3_i32_130 = arith.constant 3 : i32
    %452 = arith.addi %408, %c3_i32_130 : i32
    %453 = arith.index_cast %arg0 : i32 to index
    %454 = arith.index_cast %452 : i32 to index
    %455 = memref.load %arg2[%453, %454] : memref<4x64xi32, #tpu.memory_space<smem>>
    %c0_131 = arith.constant 0 : index
    %456 = arith.index_cast %455 : i32 to index
    %c0_132 = arith.constant 0 : index
    %457 = vector.load %arg4[%c0_131, %456, %c0_132] : memref<1x256x128xf32, #tpu.memory_space<vmem>>, vector<1x1x128xf32>
    %458 = vector.shape_cast %457 : vector<1x1x128xf32> to vector<1x128xf32>
    %459 = vector.broadcast %451 : f32 to vector<1x128xf32>
    %460 = arith.mulf %459, %458 : vector<1x128xf32>
    %461 = arith.addf %447, %460 : vector<1x128xf32>
    %462 = arith.index_cast %c7_i32 : i32 to index
    %c0_133 = arith.constant 0 : index
    %463 = vector.load %arg6[%462, %c0_133] : memref<16x128xf32, #tpu.memory_space<vmem>>, vector<1x128xf32>
    tpu.vector_store %arg6[%462, %c0_133], %461 {strides = array<i32>} : memref<16x128xf32, #tpu.memory_space<vmem>>, vector<1x128xf32>,
    %c8_i32 = arith.constant 8 : i32
    %c16_i32_134 = arith.constant 16 : i32
    %464 = arith.muli %arg1, %c16_i32_134 : i32
    %465 = arith.addi %464, %c8_i32 : i32
    %c4_i32_135 = arith.constant 4 : i32
    %466 = arith.muli %465, %c4_i32_135 : i32
    %467 = arith.index_cast %arg0 : i32 to index
    %468 = arith.index_cast %466 : i32 to index
    %469 = memref.load %arg3[%467, %468] : memref<4x64xf32, #tpu.memory_space<smem>>
    %470 = arith.index_cast %arg0 : i32 to index
    %471 = arith.index_cast %466 : i32 to index
    %472 = memref.load %arg2[%470, %471] : memref<4x64xi32, #tpu.memory_space<smem>>
    %c0_136 = arith.constant 0 : index
    %473 = arith.index_cast %472 : i32 to index
    %c0_137 = arith.constant 0 : index
    %474 = vector.load %arg4[%c0_136, %473, %c0_137] : memref<1x256x128xf32, #tpu.memory_space<vmem>>, vector<1x1x128xf32>
    %475 = vector.shape_cast %474 : vector<1x1x128xf32> to vector<1x128xf32>
    %476 = vector.broadcast %469 : f32 to vector<1x128xf32>
    %477 = arith.mulf %476, %475 : vector<1x128xf32>
    %c1_i32_138 = arith.constant 1 : i32
    %478 = arith.addi %466, %c1_i32_138 : i32
    %479 = arith.index_cast %arg0 : i32 to index
    %480 = arith.index_cast %478 : i32 to index
    %481 = memref.load %arg3[%479, %480] : memref<4x64xf32, #tpu.memory_space<smem>>
    %c1_i32_139 = arith.constant 1 : i32
    %482 = arith.addi %466, %c1_i32_139 : i32
    %483 = arith.index_cast %arg0 : i32 to index
    %484 = arith.index_cast %482 : i32 to index
    %485 = memref.load %arg2[%483, %484] : memref<4x64xi32, #tpu.memory_space<smem>>
    %c0_140 = arith.constant 0 : index
    %486 = arith.index_cast %485 : i32 to index
    %c0_141 = arith.constant 0 : index
    %487 = vector.load %arg4[%c0_140, %486, %c0_141] : memref<1x256x128xf32, #tpu.memory_space<vmem>>, vector<1x1x128xf32>
    %488 = vector.shape_cast %487 : vector<1x1x128xf32> to vector<1x128xf32>
    %489 = vector.broadcast %481 : f32 to vector<1x128xf32>
    %490 = arith.mulf %489, %488 : vector<1x128xf32>
    %491 = arith.addf %477, %490 : vector<1x128xf32>
    %c2_i32_142 = arith.constant 2 : i32
    %492 = arith.addi %466, %c2_i32_142 : i32
    %493 = arith.index_cast %arg0 : i32 to index
    %494 = arith.index_cast %492 : i32 to index
    %495 = memref.load %arg3[%493, %494] : memref<4x64xf32, #tpu.memory_space<smem>>
    %c2_i32_143 = arith.constant 2 : i32
    %496 = arith.addi %466, %c2_i32_143 : i32
    %497 = arith.index_cast %arg0 : i32 to index
    %498 = arith.index_cast %496 : i32 to index
    %499 = memref.load %arg2[%497, %498] : memref<4x64xi32, #tpu.memory_space<smem>>
    %c0_144 = arith.constant 0 : index
    %500 = arith.index_cast %499 : i32 to index
    %c0_145 = arith.constant 0 : index
    %501 = vector.load %arg4[%c0_144, %500, %c0_145] : memref<1x256x128xf32, #tpu.memory_space<vmem>>, vector<1x1x128xf32>
    %502 = vector.shape_cast %501 : vector<1x1x128xf32> to vector<1x128xf32>
    %503 = vector.broadcast %495 : f32 to vector<1x128xf32>
    %504 = arith.mulf %503, %502 : vector<1x128xf32>
    %505 = arith.addf %491, %504 : vector<1x128xf32>
    %c3_i32_146 = arith.constant 3 : i32
    %506 = arith.addi %466, %c3_i32_146 : i32
    %507 = arith.index_cast %arg0 : i32 to index
    %508 = arith.index_cast %506 : i32 to index
    %509 = memref.load %arg3[%507, %508] : memref<4x64xf32, #tpu.memory_space<smem>>
    %c3_i32_147 = arith.constant 3 : i32
    %510 = arith.addi %466, %c3_i32_147 : i32
    %511 = arith.index_cast %arg0 : i32 to index
    %512 = arith.index_cast %510 : i32 to index
    %513 = memref.load %arg2[%511, %512] : memref<4x64xi32, #tpu.memory_space<smem>>
    %c0_148 = arith.constant 0 : index
    %514 = arith.index_cast %513 : i32 to index
    %c0_149 = arith.constant 0 : index
    %515 = vector.load %arg4[%c0_148, %514, %c0_149] : memref<1x256x128xf32, #tpu.memory_space<vmem>>, vector<1x1x128xf32>
    %516 = vector.shape_cast %515 : vector<1x1x128xf32> to vector<1x128xf32>
    %517 = vector.broadcast %509 : f32 to vector<1x128xf32>
    %518 = arith.mulf %517, %516 : vector<1x128xf32>
    %519 = arith.addf %505, %518 : vector<1x128xf32>
    %520 = arith.index_cast %c8_i32 : i32 to index
    %c0_150 = arith.constant 0 : index
    %521 = vector.load %arg6[%520, %c0_150] : memref<16x128xf32, #tpu.memory_space<vmem>>, vector<1x128xf32>
    tpu.vector_store %arg6[%520, %c0_150], %519 {strides = array<i32>} : memref<16x128xf32, #tpu.memory_space<vmem>>, vector<1x128xf32>,
    %c9_i32 = arith.constant 9 : i32
    %c16_i32_151 = arith.constant 16 : i32
    %522 = arith.muli %arg1, %c16_i32_151 : i32
    %523 = arith.addi %522, %c9_i32 : i32
    %c4_i32_152 = arith.constant 4 : i32
    %524 = arith.muli %523, %c4_i32_152 : i32
    %525 = arith.index_cast %arg0 : i32 to index
    %526 = arith.index_cast %524 : i32 to index
    %527 = memref.load %arg3[%525, %526] : memref<4x64xf32, #tpu.memory_space<smem>>
    %528 = arith.index_cast %arg0 : i32 to index
    %529 = arith.index_cast %524 : i32 to index
    %530 = memref.load %arg2[%528, %529] : memref<4x64xi32, #tpu.memory_space<smem>>
    %c0_153 = arith.constant 0 : index
    %531 = arith.index_cast %530 : i32 to index
    %c0_154 = arith.constant 0 : index
    %532 = vector.load %arg4[%c0_153, %531, %c0_154] : memref<1x256x128xf32, #tpu.memory_space<vmem>>, vector<1x1x128xf32>
    %533 = vector.shape_cast %532 : vector<1x1x128xf32> to vector<1x128xf32>
    %534 = vector.broadcast %527 : f32 to vector<1x128xf32>
    %535 = arith.mulf %534, %533 : vector<1x128xf32>
    %c1_i32_155 = arith.constant 1 : i32
    %536 = arith.addi %524, %c1_i32_155 : i32
    %537 = arith.index_cast %arg0 : i32 to index
    %538 = arith.index_cast %536 : i32 to index
    %539 = memref.load %arg3[%537, %538] : memref<4x64xf32, #tpu.memory_space<smem>>
    %c1_i32_156 = arith.constant 1 : i32
    %540 = arith.addi %524, %c1_i32_156 : i32
    %541 = arith.index_cast %arg0 : i32 to index
    %542 = arith.index_cast %540 : i32 to index
    %543 = memref.load %arg2[%541, %542] : memref<4x64xi32, #tpu.memory_space<smem>>
    %c0_157 = arith.constant 0 : index
    %544 = arith.index_cast %543 : i32 to index
    %c0_158 = arith.constant 0 : index
    %545 = vector.load %arg4[%c0_157, %544, %c0_158] : memref<1x256x128xf32, #tpu.memory_space<vmem>>, vector<1x1x128xf32>
    %546 = vector.shape_cast %545 : vector<1x1x128xf32> to vector<1x128xf32>
    %547 = vector.broadcast %539 : f32 to vector<1x128xf32>
    %548 = arith.mulf %547, %546 : vector<1x128xf32>
    %549 = arith.addf %535, %548 : vector<1x128xf32>
    %c2_i32_159 = arith.constant 2 : i32
    %550 = arith.addi %524, %c2_i32_159 : i32
    %551 = arith.index_cast %arg0 : i32 to index
    %552 = arith.index_cast %550 : i32 to index
    %553 = memref.load %arg3[%551, %552] : memref<4x64xf32, #tpu.memory_space<smem>>
    %c2_i32_160 = arith.constant 2 : i32
    %554 = arith.addi %524, %c2_i32_160 : i32
    %555 = arith.index_cast %arg0 : i32 to index
    %556 = arith.index_cast %554 : i32 to index
    %557 = memref.load %arg2[%555, %556] : memref<4x64xi32, #tpu.memory_space<smem>>
    %c0_161 = arith.constant 0 : index
    %558 = arith.index_cast %557 : i32 to index
    %c0_162 = arith.constant 0 : index
    %559 = vector.load %arg4[%c0_161, %558, %c0_162] : memref<1x256x128xf32, #tpu.memory_space<vmem>>, vector<1x1x128xf32>
    %560 = vector.shape_cast %559 : vector<1x1x128xf32> to vector<1x128xf32>
    %561 = vector.broadcast %553 : f32 to vector<1x128xf32>
    %562 = arith.mulf %561, %560 : vector<1x128xf32>
    %563 = arith.addf %549, %562 : vector<1x128xf32>
    %c3_i32_163 = arith.constant 3 : i32
    %564 = arith.addi %524, %c3_i32_163 : i32
    %565 = arith.index_cast %arg0 : i32 to index
    %566 = arith.index_cast %564 : i32 to index
    %567 = memref.load %arg3[%565, %566] : memref<4x64xf32, #tpu.memory_space<smem>>
    %c3_i32_164 = arith.constant 3 : i32
    %568 = arith.addi %524, %c3_i32_164 : i32
    %569 = arith.index_cast %arg0 : i32 to index
    %570 = arith.index_cast %568 : i32 to index
    %571 = memref.load %arg2[%569, %570] : memref<4x64xi32, #tpu.memory_space<smem>>
    %c0_165 = arith.constant 0 : index
    %572 = arith.index_cast %571 : i32 to index
    %c0_166 = arith.constant 0 : index
    %573 = vector.load %arg4[%c0_165, %572, %c0_166] : memref<1x256x128xf32, #tpu.memory_space<vmem>>, vector<1x1x128xf32>
    %574 = vector.shape_cast %573 : vector<1x1x128xf32> to vector<1x128xf32>
    %575 = vector.broadcast %567 : f32 to vector<1x128xf32>
    %576 = arith.mulf %575, %574 : vector<1x128xf32>
    %577 = arith.addf %563, %576 : vector<1x128xf32>
    %578 = arith.index_cast %c9_i32 : i32 to index
    %c0_167 = arith.constant 0 : index
    %579 = vector.load %arg6[%578, %c0_167] : memref<16x128xf32, #tpu.memory_space<vmem>>, vector<1x128xf32>
    tpu.vector_store %arg6[%578, %c0_167], %577 {strides = array<i32>} : memref<16x128xf32, #tpu.memory_space<vmem>>, vector<1x128xf32>,
    %c10_i32 = arith.constant 10 : i32
    %c16_i32_168 = arith.constant 16 : i32
    %580 = arith.muli %arg1, %c16_i32_168 : i32
    %581 = arith.addi %580, %c10_i32 : i32
    %c4_i32_169 = arith.constant 4 : i32
    %582 = arith.muli %581, %c4_i32_169 : i32
    %583 = arith.index_cast %arg0 : i32 to index
    %584 = arith.index_cast %582 : i32 to index
    %585 = memref.load %arg3[%583, %584] : memref<4x64xf32, #tpu.memory_space<smem>>
    %586 = arith.index_cast %arg0 : i32 to index
    %587 = arith.index_cast %582 : i32 to index
    %588 = memref.load %arg2[%586, %587] : memref<4x64xi32, #tpu.memory_space<smem>>
    %c0_170 = arith.constant 0 : index
    %589 = arith.index_cast %588 : i32 to index
    %c0_171 = arith.constant 0 : index
    %590 = vector.load %arg4[%c0_170, %589, %c0_171] : memref<1x256x128xf32, #tpu.memory_space<vmem>>, vector<1x1x128xf32>
    %591 = vector.shape_cast %590 : vector<1x1x128xf32> to vector<1x128xf32>
    %592 = vector.broadcast %585 : f32 to vector<1x128xf32>
    %593 = arith.mulf %592, %591 : vector<1x128xf32>
    %c1_i32_172 = arith.constant 1 : i32
    %594 = arith.addi %582, %c1_i32_172 : i32
    %595 = arith.index_cast %arg0 : i32 to index
    %596 = arith.index_cast %594 : i32 to index
    %597 = memref.load %arg3[%595, %596] : memref<4x64xf32, #tpu.memory_space<smem>>
    %c1_i32_173 = arith.constant 1 : i32
    %598 = arith.addi %582, %c1_i32_173 : i32
    %599 = arith.index_cast %arg0 : i32 to index
    %600 = arith.index_cast %598 : i32 to index
    %601 = memref.load %arg2[%599, %600] : memref<4x64xi32, #tpu.memory_space<smem>>
    %c0_174 = arith.constant 0 : index
    %602 = arith.index_cast %601 : i32 to index
    %c0_175 = arith.constant 0 : index
    %603 = vector.load %arg4[%c0_174, %602, %c0_175] : memref<1x256x128xf32, #tpu.memory_space<vmem>>, vector<1x1x128xf32>
    %604 = vector.shape_cast %603 : vector<1x1x128xf32> to vector<1x128xf32>
    %605 = vector.broadcast %597 : f32 to vector<1x128xf32>
    %606 = arith.mulf %605, %604 : vector<1x128xf32>
    %607 = arith.addf %593, %606 : vector<1x128xf32>
    %c2_i32_176 = arith.constant 2 : i32
    %608 = arith.addi %582, %c2_i32_176 : i32
    %609 = arith.index_cast %arg0 : i32 to index
    %610 = arith.index_cast %608 : i32 to index
    %611 = memref.load %arg3[%609, %610] : memref<4x64xf32, #tpu.memory_space<smem>>
    %c2_i32_177 = arith.constant 2 : i32
    %612 = arith.addi %582, %c2_i32_177 : i32
    %613 = arith.index_cast %arg0 : i32 to index
    %614 = arith.index_cast %612 : i32 to index
    %615 = memref.load %arg2[%613, %614] : memref<4x64xi32, #tpu.memory_space<smem>>
    %c0_178 = arith.constant 0 : index
    %616 = arith.index_cast %615 : i32 to index
    %c0_179 = arith.constant 0 : index
    %617 = vector.load %arg4[%c0_178, %616, %c0_179] : memref<1x256x128xf32, #tpu.memory_space<vmem>>, vector<1x1x128xf32>
    %618 = vector.shape_cast %617 : vector<1x1x128xf32> to vector<1x128xf32>
    %619 = vector.broadcast %611 : f32 to vector<1x128xf32>
    %620 = arith.mulf %619, %618 : vector<1x128xf32>
    %621 = arith.addf %607, %620 : vector<1x128xf32>
    %c3_i32_180 = arith.constant 3 : i32
    %622 = arith.addi %582, %c3_i32_180 : i32
    %623 = arith.index_cast %arg0 : i32 to index
    %624 = arith.index_cast %622 : i32 to index
    %625 = memref.load %arg3[%623, %624] : memref<4x64xf32, #tpu.memory_space<smem>>
    %c3_i32_181 = arith.constant 3 : i32
    %626 = arith.addi %582, %c3_i32_181 : i32
    %627 = arith.index_cast %arg0 : i32 to index
    %628 = arith.index_cast %626 : i32 to index
    %629 = memref.load %arg2[%627, %628] : memref<4x64xi32, #tpu.memory_space<smem>>
    %c0_182 = arith.constant 0 : index
    %630 = arith.index_cast %629 : i32 to index
    %c0_183 = arith.constant 0 : index
    %631 = vector.load %arg4[%c0_182, %630, %c0_183] : memref<1x256x128xf32, #tpu.memory_space<vmem>>, vector<1x1x128xf32>
    %632 = vector.shape_cast %631 : vector<1x1x128xf32> to vector<1x128xf32>
    %633 = vector.broadcast %625 : f32 to vector<1x128xf32>
    %634 = arith.mulf %633, %632 : vector<1x128xf32>
    %635 = arith.addf %621, %634 : vector<1x128xf32>
    %636 = arith.index_cast %c10_i32 : i32 to index
    %c0_184 = arith.constant 0 : index
    %637 = vector.load %arg6[%636, %c0_184] : memref<16x128xf32, #tpu.memory_space<vmem>>, vector<1x128xf32>
    tpu.vector_store %arg6[%636, %c0_184], %635 {strides = array<i32>} : memref<16x128xf32, #tpu.memory_space<vmem>>, vector<1x128xf32>,
    %c11_i32 = arith.constant 11 : i32
    %c16_i32_185 = arith.constant 16 : i32
    %638 = arith.muli %arg1, %c16_i32_185 : i32
    %639 = arith.addi %638, %c11_i32 : i32
    %c4_i32_186 = arith.constant 4 : i32
    %640 = arith.muli %639, %c4_i32_186 : i32
    %641 = arith.index_cast %arg0 : i32 to index
    %642 = arith.index_cast %640 : i32 to index
    %643 = memref.load %arg3[%641, %642] : memref<4x64xf32, #tpu.memory_space<smem>>
    %644 = arith.index_cast %arg0 : i32 to index
    %645 = arith.index_cast %640 : i32 to index
    %646 = memref.load %arg2[%644, %645] : memref<4x64xi32, #tpu.memory_space<smem>>
    %c0_187 = arith.constant 0 : index
    %647 = arith.index_cast %646 : i32 to index
    %c0_188 = arith.constant 0 : index
    %648 = vector.load %arg4[%c0_187, %647, %c0_188] : memref<1x256x128xf32, #tpu.memory_space<vmem>>, vector<1x1x128xf32>
    %649 = vector.shape_cast %648 : vector<1x1x128xf32> to vector<1x128xf32>
    %650 = vector.broadcast %643 : f32 to vector<1x128xf32>
    %651 = arith.mulf %650, %649 : vector<1x128xf32>
    %c1_i32_189 = arith.constant 1 : i32
    %652 = arith.addi %640, %c1_i32_189 : i32
    %653 = arith.index_cast %arg0 : i32 to index
    %654 = arith.index_cast %652 : i32 to index
    %655 = memref.load %arg3[%653, %654] : memref<4x64xf32, #tpu.memory_space<smem>>
    %c1_i32_190 = arith.constant 1 : i32
    %656 = arith.addi %640, %c1_i32_190 : i32
    %657 = arith.index_cast %arg0 : i32 to index
    %658 = arith.index_cast %656 : i32 to index
    %659 = memref.load %arg2[%657, %658] : memref<4x64xi32, #tpu.memory_space<smem>>
    %c0_191 = arith.constant 0 : index
    %660 = arith.index_cast %659 : i32 to index
    %c0_192 = arith.constant 0 : index
    %661 = vector.load %arg4[%c0_191, %660, %c0_192] : memref<1x256x128xf32, #tpu.memory_space<vmem>>, vector<1x1x128xf32>
    %662 = vector.shape_cast %661 : vector<1x1x128xf32> to vector<1x128xf32>
    %663 = vector.broadcast %655 : f32 to vector<1x128xf32>
    %664 = arith.mulf %663, %662 : vector<1x128xf32>
    %665 = arith.addf %651, %664 : vector<1x128xf32>
    %c2_i32_193 = arith.constant 2 : i32
    %666 = arith.addi %640, %c2_i32_193 : i32
    %667 = arith.index_cast %arg0 : i32 to index
    %668 = arith.index_cast %666 : i32 to index
    %669 = memref.load %arg3[%667, %668] : memref<4x64xf32, #tpu.memory_space<smem>>
    %c2_i32_194 = arith.constant 2 : i32
    %670 = arith.addi %640, %c2_i32_194 : i32
    %671 = arith.index_cast %arg0 : i32 to index
    %672 = arith.index_cast %670 : i32 to index
    %673 = memref.load %arg2[%671, %672] : memref<4x64xi32, #tpu.memory_space<smem>>
    %c0_195 = arith.constant 0 : index
    %674 = arith.index_cast %673 : i32 to index
    %c0_196 = arith.constant 0 : index
    %675 = vector.load %arg4[%c0_195, %674, %c0_196] : memref<1x256x128xf32, #tpu.memory_space<vmem>>, vector<1x1x128xf32>
    %676 = vector.shape_cast %675 : vector<1x1x128xf32> to vector<1x128xf32>
    %677 = vector.broadcast %669 : f32 to vector<1x128xf32>
    %678 = arith.mulf %677, %676 : vector<1x128xf32>
    %679 = arith.addf %665, %678 : vector<1x128xf32>
    %c3_i32_197 = arith.constant 3 : i32
    %680 = arith.addi %640, %c3_i32_197 : i32
    %681 = arith.index_cast %arg0 : i32 to index
    %682 = arith.index_cast %680 : i32 to index
    %683 = memref.load %arg3[%681, %682] : memref<4x64xf32, #tpu.memory_space<smem>>
    %c3_i32_198 = arith.constant 3 : i32
    %684 = arith.addi %640, %c3_i32_198 : i32
    %685 = arith.index_cast %arg0 : i32 to index
    %686 = arith.index_cast %684 : i32 to index
    %687 = memref.load %arg2[%685, %686] : memref<4x64xi32, #tpu.memory_space<smem>>
    %c0_199 = arith.constant 0 : index
    %688 = arith.index_cast %687 : i32 to index
    %c0_200 = arith.constant 0 : index
    %689 = vector.load %arg4[%c0_199, %688, %c0_200] : memref<1x256x128xf32, #tpu.memory_space<vmem>>, vector<1x1x128xf32>
    %690 = vector.shape_cast %689 : vector<1x1x128xf32> to vector<1x128xf32>
    %691 = vector.broadcast %683 : f32 to vector<1x128xf32>
    %692 = arith.mulf %691, %690 : vector<1x128xf32>
    %693 = arith.addf %679, %692 : vector<1x128xf32>
    %694 = arith.index_cast %c11_i32 : i32 to index
    %c0_201 = arith.constant 0 : index
    %695 = vector.load %arg6[%694, %c0_201] : memref<16x128xf32, #tpu.memory_space<vmem>>, vector<1x128xf32>
    tpu.vector_store %arg6[%694, %c0_201], %693 {strides = array<i32>} : memref<16x128xf32, #tpu.memory_space<vmem>>, vector<1x128xf32>,
    %c12_i32 = arith.constant 12 : i32
    %c16_i32_202 = arith.constant 16 : i32
    %696 = arith.muli %arg1, %c16_i32_202 : i32
    %697 = arith.addi %696, %c12_i32 : i32
    %c4_i32_203 = arith.constant 4 : i32
    %698 = arith.muli %697, %c4_i32_203 : i32
    %699 = arith.index_cast %arg0 : i32 to index
    %700 = arith.index_cast %698 : i32 to index
    %701 = memref.load %arg3[%699, %700] : memref<4x64xf32, #tpu.memory_space<smem>>
    %702 = arith.index_cast %arg0 : i32 to index
    %703 = arith.index_cast %698 : i32 to index
    %704 = memref.load %arg2[%702, %703] : memref<4x64xi32, #tpu.memory_space<smem>>
    %c0_204 = arith.constant 0 : index
    %705 = arith.index_cast %704 : i32 to index
    %c0_205 = arith.constant 0 : index
    %706 = vector.load %arg4[%c0_204, %705, %c0_205] : memref<1x256x128xf32, #tpu.memory_space<vmem>>, vector<1x1x128xf32>
    %707 = vector.shape_cast %706 : vector<1x1x128xf32> to vector<1x128xf32>
    %708 = vector.broadcast %701 : f32 to vector<1x128xf32>
    %709 = arith.mulf %708, %707 : vector<1x128xf32>
    %c1_i32_206 = arith.constant 1 : i32
    %710 = arith.addi %698, %c1_i32_206 : i32
    %711 = arith.index_cast %arg0 : i32 to index
    %712 = arith.index_cast %710 : i32 to index
    %713 = memref.load %arg3[%711, %712] : memref<4x64xf32, #tpu.memory_space<smem>>
    %c1_i32_207 = arith.constant 1 : i32
    %714 = arith.addi %698, %c1_i32_207 : i32
    %715 = arith.index_cast %arg0 : i32 to index
    %716 = arith.index_cast %714 : i32 to index
    %717 = memref.load %arg2[%715, %716] : memref<4x64xi32, #tpu.memory_space<smem>>
    %c0_208 = arith.constant 0 : index
    %718 = arith.index_cast %717 : i32 to index
    %c0_209 = arith.constant 0 : index
    %719 = vector.load %arg4[%c0_208, %718, %c0_209] : memref<1x256x128xf32, #tpu.memory_space<vmem>>, vector<1x1x128xf32>
    %720 = vector.shape_cast %719 : vector<1x1x128xf32> to vector<1x128xf32>
    %721 = vector.broadcast %713 : f32 to vector<1x128xf32>
    %722 = arith.mulf %721, %720 : vector<1x128xf32>
    %723 = arith.addf %709, %722 : vector<1x128xf32>
    %c2_i32_210 = arith.constant 2 : i32
    %724 = arith.addi %698, %c2_i32_210 : i32
    %725 = arith.index_cast %arg0 : i32 to index
    %726 = arith.index_cast %724 : i32 to index
    %727 = memref.load %arg3[%725, %726] : memref<4x64xf32, #tpu.memory_space<smem>>
    %c2_i32_211 = arith.constant 2 : i32
    %728 = arith.addi %698, %c2_i32_211 : i32
    %729 = arith.index_cast %arg0 : i32 to index
    %730 = arith.index_cast %728 : i32 to index
    %731 = memref.load %arg2[%729, %730] : memref<4x64xi32, #tpu.memory_space<smem>>
    %c0_212 = arith.constant 0 : index
    %732 = arith.index_cast %731 : i32 to index
    %c0_213 = arith.constant 0 : index
    %733 = vector.load %arg4[%c0_212, %732, %c0_213] : memref<1x256x128xf32, #tpu.memory_space<vmem>>, vector<1x1x128xf32>
    %734 = vector.shape_cast %733 : vector<1x1x128xf32> to vector<1x128xf32>
    %735 = vector.broadcast %727 : f32 to vector<1x128xf32>
    %736 = arith.mulf %735, %734 : vector<1x128xf32>
    %737 = arith.addf %723, %736 : vector<1x128xf32>
    %c3_i32_214 = arith.constant 3 : i32
    %738 = arith.addi %698, %c3_i32_214 : i32
    %739 = arith.index_cast %arg0 : i32 to index
    %740 = arith.index_cast %738 : i32 to index
    %741 = memref.load %arg3[%739, %740] : memref<4x64xf32, #tpu.memory_space<smem>>
    %c3_i32_215 = arith.constant 3 : i32
    %742 = arith.addi %698, %c3_i32_215 : i32
    %743 = arith.index_cast %arg0 : i32 to index
    %744 = arith.index_cast %742 : i32 to index
    %745 = memref.load %arg2[%743, %744] : memref<4x64xi32, #tpu.memory_space<smem>>
    %c0_216 = arith.constant 0 : index
    %746 = arith.index_cast %745 : i32 to index
    %c0_217 = arith.constant 0 : index
    %747 = vector.load %arg4[%c0_216, %746, %c0_217] : memref<1x256x128xf32, #tpu.memory_space<vmem>>, vector<1x1x128xf32>
    %748 = vector.shape_cast %747 : vector<1x1x128xf32> to vector<1x128xf32>
    %749 = vector.broadcast %741 : f32 to vector<1x128xf32>
    %750 = arith.mulf %749, %748 : vector<1x128xf32>
    %751 = arith.addf %737, %750 : vector<1x128xf32>
    %752 = arith.index_cast %c12_i32 : i32 to index
    %c0_218 = arith.constant 0 : index
    %753 = vector.load %arg6[%752, %c0_218] : memref<16x128xf32, #tpu.memory_space<vmem>>, vector<1x128xf32>
    tpu.vector_store %arg6[%752, %c0_218], %751 {strides = array<i32>} : memref<16x128xf32, #tpu.memory_space<vmem>>, vector<1x128xf32>,
    %c13_i32 = arith.constant 13 : i32
    %c16_i32_219 = arith.constant 16 : i32
    %754 = arith.muli %arg1, %c16_i32_219 : i32
    %755 = arith.addi %754, %c13_i32 : i32
    %c4_i32_220 = arith.constant 4 : i32
    %756 = arith.muli %755, %c4_i32_220 : i32
    %757 = arith.index_cast %arg0 : i32 to index
    %758 = arith.index_cast %756 : i32 to index
    %759 = memref.load %arg3[%757, %758] : memref<4x64xf32, #tpu.memory_space<smem>>
    %760 = arith.index_cast %arg0 : i32 to index
    %761 = arith.index_cast %756 : i32 to index
    %762 = memref.load %arg2[%760, %761] : memref<4x64xi32, #tpu.memory_space<smem>>
    %c0_221 = arith.constant 0 : index
    %763 = arith.index_cast %762 : i32 to index
    %c0_222 = arith.constant 0 : index
    %764 = vector.load %arg4[%c0_221, %763, %c0_222] : memref<1x256x128xf32, #tpu.memory_space<vmem>>, vector<1x1x128xf32>
    %765 = vector.shape_cast %764 : vector<1x1x128xf32> to vector<1x128xf32>
    %766 = vector.broadcast %759 : f32 to vector<1x128xf32>
    %767 = arith.mulf %766, %765 : vector<1x128xf32>
    %c1_i32_223 = arith.constant 1 : i32
    %768 = arith.addi %756, %c1_i32_223 : i32
    %769 = arith.index_cast %arg0 : i32 to index
    %770 = arith.index_cast %768 : i32 to index
    %771 = memref.load %arg3[%769, %770] : memref<4x64xf32, #tpu.memory_space<smem>>
    %c1_i32_224 = arith.constant 1 : i32
    %772 = arith.addi %756, %c1_i32_224 : i32
    %773 = arith.index_cast %arg0 : i32 to index
    %774 = arith.index_cast %772 : i32 to index
    %775 = memref.load %arg2[%773, %774] : memref<4x64xi32, #tpu.memory_space<smem>>
    %c0_225 = arith.constant 0 : index
    %776 = arith.index_cast %775 : i32 to index
    %c0_226 = arith.constant 0 : index
    %777 = vector.load %arg4[%c0_225, %776, %c0_226] : memref<1x256x128xf32, #tpu.memory_space<vmem>>, vector<1x1x128xf32>
    %778 = vector.shape_cast %777 : vector<1x1x128xf32> to vector<1x128xf32>
    %779 = vector.broadcast %771 : f32 to vector<1x128xf32>
    %780 = arith.mulf %779, %778 : vector<1x128xf32>
    %781 = arith.addf %767, %780 : vector<1x128xf32>
    %c2_i32_227 = arith.constant 2 : i32
    %782 = arith.addi %756, %c2_i32_227 : i32
    %783 = arith.index_cast %arg0 : i32 to index
    %784 = arith.index_cast %782 : i32 to index
    %785 = memref.load %arg3[%783, %784] : memref<4x64xf32, #tpu.memory_space<smem>>
    %c2_i32_228 = arith.constant 2 : i32
    %786 = arith.addi %756, %c2_i32_228 : i32
    %787 = arith.index_cast %arg0 : i32 to index
    %788 = arith.index_cast %786 : i32 to index
    %789 = memref.load %arg2[%787, %788] : memref<4x64xi32, #tpu.memory_space<smem>>
    %c0_229 = arith.constant 0 : index
    %790 = arith.index_cast %789 : i32 to index
    %c0_230 = arith.constant 0 : index
    %791 = vector.load %arg4[%c0_229, %790, %c0_230] : memref<1x256x128xf32, #tpu.memory_space<vmem>>, vector<1x1x128xf32>
    %792 = vector.shape_cast %791 : vector<1x1x128xf32> to vector<1x128xf32>
    %793 = vector.broadcast %785 : f32 to vector<1x128xf32>
    %794 = arith.mulf %793, %792 : vector<1x128xf32>
    %795 = arith.addf %781, %794 : vector<1x128xf32>
    %c3_i32_231 = arith.constant 3 : i32
    %796 = arith.addi %756, %c3_i32_231 : i32
    %797 = arith.index_cast %arg0 : i32 to index
    %798 = arith.index_cast %796 : i32 to index
    %799 = memref.load %arg3[%797, %798] : memref<4x64xf32, #tpu.memory_space<smem>>
    %c3_i32_232 = arith.constant 3 : i32
    %800 = arith.addi %756, %c3_i32_232 : i32
    %801 = arith.index_cast %arg0 : i32 to index
    %802 = arith.index_cast %800 : i32 to index
    %803 = memref.load %arg2[%801, %802] : memref<4x64xi32, #tpu.memory_space<smem>>
    %c0_233 = arith.constant 0 : index
    %804 = arith.index_cast %803 : i32 to index
    %c0_234 = arith.constant 0 : index
    %805 = vector.load %arg4[%c0_233, %804, %c0_234] : memref<1x256x128xf32, #tpu.memory_space<vmem>>, vector<1x1x128xf32>
    %806 = vector.shape_cast %805 : vector<1x1x128xf32> to vector<1x128xf32>
    %807 = vector.broadcast %799 : f32 to vector<1x128xf32>
    %808 = arith.mulf %807, %806 : vector<1x128xf32>
    %809 = arith.addf %795, %808 : vector<1x128xf32>
    %810 = arith.index_cast %c13_i32 : i32 to index
    %c0_235 = arith.constant 0 : index
    %811 = vector.load %arg6[%810, %c0_235] : memref<16x128xf32, #tpu.memory_space<vmem>>, vector<1x128xf32>
    tpu.vector_store %arg6[%810, %c0_235], %809 {strides = array<i32>} : memref<16x128xf32, #tpu.memory_space<vmem>>, vector<1x128xf32>,
    %c14_i32 = arith.constant 14 : i32
    %c16_i32_236 = arith.constant 16 : i32
    %812 = arith.muli %arg1, %c16_i32_236 : i32
    %813 = arith.addi %812, %c14_i32 : i32
    %c4_i32_237 = arith.constant 4 : i32
    %814 = arith.muli %813, %c4_i32_237 : i32
    %815 = arith.index_cast %arg0 : i32 to index
    %816 = arith.index_cast %814 : i32 to index
    %817 = memref.load %arg3[%815, %816] : memref<4x64xf32, #tpu.memory_space<smem>>
    %818 = arith.index_cast %arg0 : i32 to index
    %819 = arith.index_cast %814 : i32 to index
    %820 = memref.load %arg2[%818, %819] : memref<4x64xi32, #tpu.memory_space<smem>>
    %c0_238 = arith.constant 0 : index
    %821 = arith.index_cast %820 : i32 to index
    %c0_239 = arith.constant 0 : index
    %822 = vector.load %arg4[%c0_238, %821, %c0_239] : memref<1x256x128xf32, #tpu.memory_space<vmem>>, vector<1x1x128xf32>
    %823 = vector.shape_cast %822 : vector<1x1x128xf32> to vector<1x128xf32>
    %824 = vector.broadcast %817 : f32 to vector<1x128xf32>
    %825 = arith.mulf %824, %823 : vector<1x128xf32>
    %c1_i32_240 = arith.constant 1 : i32
    %826 = arith.addi %814, %c1_i32_240 : i32
    %827 = arith.index_cast %arg0 : i32 to index
    %828 = arith.index_cast %826 : i32 to index
    %829 = memref.load %arg3[%827, %828] : memref<4x64xf32, #tpu.memory_space<smem>>
    %c1_i32_241 = arith.constant 1 : i32
    %830 = arith.addi %814, %c1_i32_241 : i32
    %831 = arith.index_cast %arg0 : i32 to index
    %832 = arith.index_cast %830 : i32 to index
    %833 = memref.load %arg2[%831, %832] : memref<4x64xi32, #tpu.memory_space<smem>>
    %c0_242 = arith.constant 0 : index
    %834 = arith.index_cast %833 : i32 to index
    %c0_243 = arith.constant 0 : index
    %835 = vector.load %arg4[%c0_242, %834, %c0_243] : memref<1x256x128xf32, #tpu.memory_space<vmem>>, vector<1x1x128xf32>
    %836 = vector.shape_cast %835 : vector<1x1x128xf32> to vector<1x128xf32>
    %837 = vector.broadcast %829 : f32 to vector<1x128xf32>
    %838 = arith.mulf %837, %836 : vector<1x128xf32>
    %839 = arith.addf %825, %838 : vector<1x128xf32>
    %c2_i32_244 = arith.constant 2 : i32
    %840 = arith.addi %814, %c2_i32_244 : i32
    %841 = arith.index_cast %arg0 : i32 to index
    %842 = arith.index_cast %840 : i32 to index
    %843 = memref.load %arg3[%841, %842] : memref<4x64xf32, #tpu.memory_space<smem>>
    %c2_i32_245 = arith.constant 2 : i32
    %844 = arith.addi %814, %c2_i32_245 : i32
    %845 = arith.index_cast %arg0 : i32 to index
    %846 = arith.index_cast %844 : i32 to index
    %847 = memref.load %arg2[%845, %846] : memref<4x64xi32, #tpu.memory_space<smem>>
    %c0_246 = arith.constant 0 : index
    %848 = arith.index_cast %847 : i32 to index
    %c0_247 = arith.constant 0 : index
    %849 = vector.load %arg4[%c0_246, %848, %c0_247] : memref<1x256x128xf32, #tpu.memory_space<vmem>>, vector<1x1x128xf32>
    %850 = vector.shape_cast %849 : vector<1x1x128xf32> to vector<1x128xf32>
    %851 = vector.broadcast %843 : f32 to vector<1x128xf32>
    %852 = arith.mulf %851, %850 : vector<1x128xf32>
    %853 = arith.addf %839, %852 : vector<1x128xf32>
    %c3_i32_248 = arith.constant 3 : i32
    %854 = arith.addi %814, %c3_i32_248 : i32
    %855 = arith.index_cast %arg0 : i32 to index
    %856 = arith.index_cast %854 : i32 to index
    %857 = memref.load %arg3[%855, %856] : memref<4x64xf32, #tpu.memory_space<smem>>
    %c3_i32_249 = arith.constant 3 : i32
    %858 = arith.addi %814, %c3_i32_249 : i32
    %859 = arith.index_cast %arg0 : i32 to index
    %860 = arith.index_cast %858 : i32 to index
    %861 = memref.load %arg2[%859, %860] : memref<4x64xi32, #tpu.memory_space<smem>>
    %c0_250 = arith.constant 0 : index
    %862 = arith.index_cast %861 : i32 to index
    %c0_251 = arith.constant 0 : index
    %863 = vector.load %arg4[%c0_250, %862, %c0_251] : memref<1x256x128xf32, #tpu.memory_space<vmem>>, vector<1x1x128xf32>
    %864 = vector.shape_cast %863 : vector<1x1x128xf32> to vector<1x128xf32>
    %865 = vector.broadcast %857 : f32 to vector<1x128xf32>
    %866 = arith.mulf %865, %864 : vector<1x128xf32>
    %867 = arith.addf %853, %866 : vector<1x128xf32>
    %868 = arith.index_cast %c14_i32 : i32 to index
    %c0_252 = arith.constant 0 : index
    %869 = vector.load %arg6[%868, %c0_252] : memref<16x128xf32, #tpu.memory_space<vmem>>, vector<1x128xf32>
    tpu.vector_store %arg6[%868, %c0_252], %867 {strides = array<i32>} : memref<16x128xf32, #tpu.memory_space<vmem>>, vector<1x128xf32>,
    %c15_i32 = arith.constant 15 : i32
    %c16_i32_253 = arith.constant 16 : i32
    %870 = arith.muli %arg1, %c16_i32_253 : i32
    %871 = arith.addi %870, %c15_i32 : i32
    %c4_i32_254 = arith.constant 4 : i32
    %872 = arith.muli %871, %c4_i32_254 : i32
    %873 = arith.index_cast %arg0 : i32 to index
    %874 = arith.index_cast %872 : i32 to index
    %875 = memref.load %arg3[%873, %874] : memref<4x64xf32, #tpu.memory_space<smem>>
    %876 = arith.index_cast %arg0 : i32 to index
    %877 = arith.index_cast %872 : i32 to index
    %878 = memref.load %arg2[%876, %877] : memref<4x64xi32, #tpu.memory_space<smem>>
    %c0_255 = arith.constant 0 : index
    %879 = arith.index_cast %878 : i32 to index
    %c0_256 = arith.constant 0 : index
    %880 = vector.load %arg4[%c0_255, %879, %c0_256] : memref<1x256x128xf32, #tpu.memory_space<vmem>>, vector<1x1x128xf32>
    %881 = vector.shape_cast %880 : vector<1x1x128xf32> to vector<1x128xf32>
    %882 = vector.broadcast %875 : f32 to vector<1x128xf32>
    %883 = arith.mulf %882, %881 : vector<1x128xf32>
    %c1_i32_257 = arith.constant 1 : i32
    %884 = arith.addi %872, %c1_i32_257 : i32
    %885 = arith.index_cast %arg0 : i32 to index
    %886 = arith.index_cast %884 : i32 to index
    %887 = memref.load %arg3[%885, %886] : memref<4x64xf32, #tpu.memory_space<smem>>
    %c1_i32_258 = arith.constant 1 : i32
    %888 = arith.addi %872, %c1_i32_258 : i32
    %889 = arith.index_cast %arg0 : i32 to index
    %890 = arith.index_cast %888 : i32 to index
    %891 = memref.load %arg2[%889, %890] : memref<4x64xi32, #tpu.memory_space<smem>>
    %c0_259 = arith.constant 0 : index
    %892 = arith.index_cast %891 : i32 to index
    %c0_260 = arith.constant 0 : index
    %893 = vector.load %arg4[%c0_259, %892, %c0_260] : memref<1x256x128xf32, #tpu.memory_space<vmem>>, vector<1x1x128xf32>
    %894 = vector.shape_cast %893 : vector<1x1x128xf32> to vector<1x128xf32>
    %895 = vector.broadcast %887 : f32 to vector<1x128xf32>
    %896 = arith.mulf %895, %894 : vector<1x128xf32>
    %897 = arith.addf %883, %896 : vector<1x128xf32>
    %c2_i32_261 = arith.constant 2 : i32
    %898 = arith.addi %872, %c2_i32_261 : i32
    %899 = arith.index_cast %arg0 : i32 to index
    %900 = arith.index_cast %898 : i32 to index
    %901 = memref.load %arg3[%899, %900] : memref<4x64xf32, #tpu.memory_space<smem>>
    %c2_i32_262 = arith.constant 2 : i32
    %902 = arith.addi %872, %c2_i32_262 : i32
    %903 = arith.index_cast %arg0 : i32 to index
    %904 = arith.index_cast %902 : i32 to index
    %905 = memref.load %arg2[%903, %904] : memref<4x64xi32, #tpu.memory_space<smem>>
    %c0_263 = arith.constant 0 : index
    %906 = arith.index_cast %905 : i32 to index
    %c0_264 = arith.constant 0 : index
    %907 = vector.load %arg4[%c0_263, %906, %c0_264] : memref<1x256x128xf32, #tpu.memory_space<vmem>>, vector<1x1x128xf32>
    %908 = vector.shape_cast %907 : vector<1x1x128xf32> to vector<1x128xf32>
    %909 = vector.broadcast %901 : f32 to vector<1x128xf32>
    %910 = arith.mulf %909, %908 : vector<1x128xf32>
    %911 = arith.addf %897, %910 : vector<1x128xf32>
    %c3_i32_265 = arith.constant 3 : i32
    %912 = arith.addi %872, %c3_i32_265 : i32
    %913 = arith.index_cast %arg0 : i32 to index
    %914 = arith.index_cast %912 : i32 to index
    %915 = memref.load %arg3[%913, %914] : memref<4x64xf32, #tpu.memory_space<smem>>
    %c3_i32_266 = arith.constant 3 : i32
    %916 = arith.addi %872, %c3_i32_266 : i32
    %917 = arith.index_cast %arg0 : i32 to index
    %918 = arith.index_cast %916 : i32 to index
    %919 = memref.load %arg2[%917, %918] : memref<4x64xi32, #tpu.memory_space<smem>>
    %c0_267 = arith.constant 0 : index
    %920 = arith.index_cast %919 : i32 to index
    %c0_268 = arith.constant 0 : index
    %921 = vector.load %arg4[%c0_267, %920, %c0_268] : memref<1x256x128xf32, #tpu.memory_space<vmem>>, vector<1x1x128xf32>
    %922 = vector.shape_cast %921 : vector<1x1x128xf32> to vector<1x128xf32>
    %923 = vector.broadcast %915 : f32 to vector<1x128xf32>
    %924 = arith.mulf %923, %922 : vector<1x128xf32>
    %925 = arith.addf %911, %924 : vector<1x128xf32>
    %926 = arith.index_cast %c15_i32 : i32 to index
    %c0_269 = arith.constant 0 : index
    %927 = vector.load %arg6[%926, %c0_269] : memref<16x128xf32, #tpu.memory_space<vmem>>, vector<1x128xf32>
    tpu.vector_store %arg6[%926, %c0_269], %925 {strides = array<i32>} : memref<16x128xf32, #tpu.memory_space<vmem>>, vector<1x128xf32>,
    %c16_i32_270 = arith.constant 16 : i32
    %c0_271 = arith.constant 0 : index
    %c0_272 = arith.constant 0 : index
    %928 = vector.load %arg6[%c0_271, %c0_272] : memref<16x128xf32, #tpu.memory_space<vmem>>, vector<16x128xf32>
    %929 = tpu.iota {dimensions = array<i32: 1>} : vector<16x128xi32>
    %c64_i32 = arith.constant 64 : i32
    %930 = vector.broadcast %c64_i32 : i32 to vector<16x128xi32>
    %931 = arith.cmpi slt, %929, %930 : vector<16x128xi32>
    %932 = arith.mulf %928, %928 : vector<16x128xf32>
    %cst = arith.constant 0.000000e+00 : f32
    %933 = vector.broadcast %cst : f32 to vector<16x128xf32>
    %934 = arith.select %931, %932, %933 : vector<16x128xi1>, vector<16x128xf32>
    %cst_273 = arith.constant dense<0.000000e+00> : vector<16xf32>
    %935 = vector.multi_reduction <add>, %934, %cst_273 [1] : vector<16x128xf32> to vector<16xf32>
    %936 = vector.shape_cast %935 : vector<16xf32> to vector<16x1xf32>
    %cst_274 = arith.constant 9.99999996E-13 : f32
    %937 = vector.broadcast %cst_274 : f32 to vector<16x1xf32>
    %938 = arith.addf %936, %937 : vector<16x1xf32>
    %939 = math.rsqrt %938 : vector<16x1xf32>
    %940 = vector.broadcast %939 : vector<16x1xf32> to vector<16x128xf32>
    %941 = arith.mulf %928, %940 : vector<16x128xf32>
    %942 = arith.select %931, %941, %928 : vector<16x128xi1>, vector<16x128xf32>
    %c0_275 = arith.constant 0 : index
    %c0_276 = arith.constant 0 : index
    %c0_277 = arith.constant 0 : index
    %943 = vector.load %arg5[%c0_275, %c0_276, %c0_277] : memref<1x16x128xf32, #tpu.memory_space<vmem>>, vector<1x16x128xf32>
    %944 = vector.shape_cast %943 : vector<1x16x128xf32> to vector<16x128xf32>
    %945 = vector.shape_cast %942 : vector<16x128xf32> to vector<1x16x128xf32>
    tpu.vector_store %arg5[%c0_275, %c0_276, %c0_277], %945 {strides = array<i32>} : memref<1x16x128xf32, #tpu.memory_space<vmem>>, vector<1x16x128xf32>,
    return
  }
  func.func @transform_0(%arg0: i32, %arg1: i32) -> (i32, i32) {
    %c0_i32 = arith.constant 0 : i32
    %c0_i32_0 = arith.constant 0 : i32
    %c0_i32_1 = arith.constant 0 : i32
    return %c0_i32, %c0_i32_0 : i32, i32
  }
  func.func @transform_1(%arg0: i32, %arg1: i32) -> (i32, i32) {
    %c0_i32 = arith.constant 0 : i32
    %c0_i32_0 = arith.constant 0 : i32
    %c0_i32_1 = arith.constant 0 : i32
    return %c0_i32, %c0_i32_0 : i32, i32
  }
  func.func @transform_2(%arg0: i32, %arg1: i32) -> (i32, i32, i32) {
    %c0_i32 = arith.constant 0 : i32
    %c0_i32_0 = arith.constant 0 : i32
    %c0_i32_1 = arith.constant 0 : i32
    return %arg0, %c0_i32, %c0_i32_0 : i32, i32, i32
  }
  func.func @transform_3(%arg0: i32, %arg1: i32) -> (i32, i32, i32) {
    %c0_i32 = arith.constant 0 : i32
    %c0_i32_0 = arith.constant 0 : i32
    return %arg0, %arg1, %c0_i32 : i32, i32, i32
  }
}

module attributes {stable_mosaic.version = 11 : i64} {
  func.func @_pairwise_kernel(%arg0: i32, %arg1: i32, %arg2: memref<1x8x64xbf16, #tpu.memory_space<vmem>>, %arg3: memref<1x8x64xbf16, #tpu.memory_space<vmem>>, %arg4: memref<1x8x8xf32, #tpu.memory_space<vmem>>) attributes {dimension_semantics = [#tpu.dimension_semantics<parallel>, #tpu.dimension_semantics<parallel>], iteration_bounds = array<i64: 2, 1>, scalar_prefetch = 0 : i64, scratch_operands = 0 : i64, tpu.core_type = #tpu.core_type<tc>, window_params = [{transform_indices = @transform_0, window_bounds = array<i64: 1, 8, 64>}, {transform_indices = @transform_1, window_bounds = array<i64: 1, 8, 64>}, {transform_indices = @transform_2, window_bounds = array<i64: 1, 8, 8>}]} {
    %c0 = arith.constant 0 : index
    %c0_0 = arith.constant 0 : index
    %c0_1 = arith.constant 0 : index
    %0 = vector.load %arg2[%c0, %c0_0, %c0_1] : memref<1x8x64xbf16, #tpu.memory_space<vmem>>, vector<1x8x64xbf16>
    %1 = vector.shape_cast %0 : vector<1x8x64xbf16> to vector<8x64xbf16>
    %c0_2 = arith.constant 0 : index
    %c0_3 = arith.constant 0 : index
    %c0_4 = arith.constant 0 : index
    %2 = vector.load %arg3[%c0_2, %c0_3, %c0_4] : memref<1x8x64xbf16, #tpu.memory_space<vmem>>, vector<1x8x64xbf16>
    %3 = vector.shape_cast %2 : vector<1x8x64xbf16> to vector<8x64xbf16>
    %cst = arith.constant dense<0.000000e+00> : vector<8x8xf32>
    %4 = tpu.matmul %1, %3, %cst {dimension_numbers = #tpu.dot_dimension_numbers<[1], [1], [0], [0], [0, 0, 1, 0], [], []>} : vector<8x64xbf16>, vector<8x64xbf16>, vector<8x8xf32> -> vector<8x8xf32>
    %cst_5 = arith.constant 1.000000e+00 : bf16
    %5 = vector.broadcast %cst_5 : bf16 to vector<8x64xbf16>
    %6 = arith.mulf %3, %3 : vector<8x64xbf16>
    %cst_6 = arith.constant dense<0.000000e+00> : vector<8x8xf32>
    %7 = tpu.matmul %5, %6, %cst_6 {dimension_numbers = #tpu.dot_dimension_numbers<[1], [1], [0], [0], [0, 0, 1, 0], [], []>} : vector<8x64xbf16>, vector<8x64xbf16>, vector<8x8xf32> -> vector<8x8xf32>
    %8 = arith.extf %1 : vector<8x64xbf16> to vector<8x64xf32>
    %9 = arith.mulf %8, %8 : vector<8x64xf32>
    %cst_7 = arith.constant dense<0.000000e+00> : vector<8xf32>
    %10 = vector.multi_reduction <add>, %9, %cst_7 [1] : vector<8x64xf32> to vector<8xf32>
    %11 = vector.shape_cast %10 : vector<8xf32> to vector<8x1xf32>
    %12 = vector.broadcast %11 : vector<8x1xf32> to vector<8x8xf32>
    %13 = arith.addf %12, %7 : vector<8x8xf32>
    %cst_8 = arith.constant 2.000000e+00 : f32
    %14 = vector.broadcast %cst_8 : f32 to vector<8x8xf32>
    %15 = arith.mulf %14, %4 : vector<8x8xf32>
    %16 = arith.subf %13, %15 : vector<8x8xf32>
    %cst_9 = arith.constant 0.000000e+00 : f32
    %17 = vector.broadcast %cst_9 : f32 to vector<8x8xf32>
    %18 = arith.maximumf %16, %17 : vector<8x8xf32>
    %c0_10 = arith.constant 0 : index
    %c0_11 = arith.constant 0 : index
    %c0_12 = arith.constant 0 : index
    %19 = vector.load %arg4[%c0_10, %c0_11, %c0_12] : memref<1x8x8xf32, #tpu.memory_space<vmem>>, vector<1x8x8xf32>
    %20 = vector.shape_cast %19 : vector<1x8x8xf32> to vector<8x8xf32>
    %21 = vector.shape_cast %18 : vector<8x8xf32> to vector<1x8x8xf32>
    tpu.vector_store %arg4[%c0_10, %c0_11, %c0_12], %21 {strides = array<i32>} : memref<1x8x8xf32, #tpu.memory_space<vmem>>, vector<1x8x8xf32>,
    return
  }
  func.func @transform_0(%arg0: i32, %arg1: i32) -> (i32, i32, i32) {
    %c0_i32 = arith.constant 0 : i32
    %c0_i32_0 = arith.constant 0 : i32
    %c0_i32_1 = arith.constant 0 : i32
    return %arg0, %c0_i32, %c0_i32_0 : i32, i32, i32
  }
  func.func @transform_1(%arg0: i32, %arg1: i32) -> (i32, i32, i32) {
    %c0_i32 = arith.constant 0 : i32
    %c0_i32_0 = arith.constant 0 : i32
    return %arg0, %arg1, %c0_i32 : i32, i32, i32
  }
  func.func @transform_2(%arg0: i32, %arg1: i32) -> (i32, i32, i32) {
    %c0_i32 = arith.constant 0 : i32
    %c0_i32_0 = arith.constant 0 : i32
    return %arg0, %c0_i32, %arg1 : i32, i32, i32
  }
}

</mosaic_0001>

<bundles_post_ra>
// kernel: forward.3
= control target key start
LH: loop header
LB: loop body
LE: loop exit
PB: predicated region body
PF: predicated region fallthrough
CT: control target
= control target key end

     0   :  { %s505_s12 = smov 0   ;;  %s507_s13 = smov 0   ;;  %s554_s0 = inlined_call_operand.vmem [shape: f32[4,64,256], index: 0, kind: input, shape index: {}]   ;;  %s555_s1 = inlined_call_operand.vmem [shape: f32[2,64], index: 1, kind: input, shape index: {}]   ;;  %s556_s2 = inlined_call_operand.vmem [shape: f32[2,1], index: 2, kind: input, shape index: {}]   ;;  %s557_s3 = inlined_call_operand.vmem [shape: f32[4,2,256], index: 3, kind: output, shape index: {}]  }
   0x1   :  { %s509_s14 = smov 0  }
   0x2 LB: > { %s25_s15 = sadd.s32 1, %s478_s13  ;;  %p413_p0 = scmp.ge.s32.totalorder %s482_s14, 1  ;;  %s482_s14 = sphi %s509_s14, %s13_s14   ;;  %s478_s13 = sphi %s507_s13, %s561_s13   ;;  %s474_s12 = sphi %s505_s12, %s560_s12  }
   0x3   : > { %p27_p1 = scmp.ge.s32.totalorder %s25_s15, 4  ;;  %p158_p2 = scmp.lt.s32.totalorder %s482_s14, 5 }
   0x5   : > { %s563_s15 = smov (%p27_p1, %s25_s15), 0  ;;  %p159_p3 = pnand %p413_p0, %p158_p2 }
   0x6   : > { %p191_p4 = scmp.lt.s32.totalorder (!%p159_p3), %s474_s12, 3 }
   0x7   : > { %162 = sbr.rel (%p159_p3) target bundleno = 192 (0xc0), region = 32 }
   0xc   : > { %v484_v0 = vmov 0   ;;  %v227_v1 = vld [vmem:[%s556_s2] sm:$0x3]  ;;  %s565_s12 = smov (!%p191_p4, %s474_s12), 3  ;;  %vm233_vm0 = vcmask 523264   ;;  %vm318_vm8 = vcmask 1041408  }
   0xd   : > { %451 = vset.pattern.permute.xlu0 %v484_v0  ;;  %s424_s18 = sshll.u32 %s565_s12, 7  ;;  %v210_v18 = vld [vmem:[%s555_s1] sm:$0x3]  ;;  %s425_s24 = sshll.u32 %s565_s12, 2 }
   0xe   : > { %230 = vperm.xlu0 %451, %v227_v1   ;;  %s198_s21 = scalar_lea.vmem %s554_s0, %s424_s18  ;;  %s208_s27 = scalar_lea.vmem %s557_s3, %s425_s24 }
   0xf   : > { %v225_v2 = vld [vmem:[%s198_s21 + $0x70] sm:$0xff]  ;;  %v226_v3 = vld [vmem:[%s198_s21 + $0x78] sm:$0xff]  ;;  %v223_v4 = vld [vmem:[%s198_s21 + $0x60] sm:$0xff] }
  0x10   : > { %245 = vmatpush.msra.mxu0 %v225_v2  ;;  %265 = vmatpush.msra.mxu1 %v226_v3  ;;  %v224_v5 = vld [vmem:[%s198_s21 + $0x68] sm:$0xff]  ;;  %v221_v6 = vld [vmem:[%s198_s21 + $0x50] sm:$0xff]  ;;  %v222_v7 = vld [vmem:[%s198_s21 + $0x58] sm:$0xff] }
  0x11   : > { %v219_v8 = vld [vmem:[%s198_s21 + $0x40] sm:$0xff]  ;;  %v220_v9 = vld [vmem:[%s198_s21 + $0x48] sm:$0xff]  ;;  %v217_v10 = vld [vmem:[%s198_s21 + $0x30] sm:$0xff] }
  0x12   : > { %246 = vmatpush.msra.mxu0 %v223_v4  ;;  %266 = vmatpush.msra.mxu1 %v224_v5  ;;  %v218_v11 = vld [vmem:[%s198_s21 + $0x38] sm:$0xff]  ;;  %v215_v12 = vld [vmem:[%s198_s21 + $0x20] sm:$0xff]  ;;  %v216_v13 = vld [vmem:[%s198_s21 + $0x28] sm:$0xff] }
  0x13   : > { %v213_v14 = vld [vmem:[%s198_s21 + $0x10] sm:$0xff]  ;;  %v214_v15 = vld [vmem:[%s198_s21 + $0x18] sm:$0xff]  ;;  %v211_v16 = vld [vmem:[%s198_s21] sm:$0xff] }
  0x14   : > { %247 = vmatpush.msra.mxu0 %v221_v6  ;;  %267 = vmatpush.msra.mxu1 %v222_v7  ;;  %v212_v17 = vld [vmem:[%s198_s21 + $0x8] sm:$0xff] }
  0x16   : > { %248 = vmatpush.msra.mxu0 %v219_v8  ;;  %268 = vmatpush.msra.mxu1 %v220_v9 }
  0x18   : > { %249 = vmatpush.msra.mxu0 %v217_v10  ;;  %269 = vmatpush.msra.mxu1 %v218_v11 }
  0x1a   : > { %250 = vmatpush.msra.mxu0 %v215_v12  ;;  %270 = vmatpush.msra.mxu1 %v216_v13 }
  0x1c   : > { %251 = vmatpush.msra.mxu0 %v213_v14  ;;  %271 = vmatpush.msra.mxu1 %v214_v15 }
  0x1e   : > { %252 = vmatpush.msra.mxu0 %v211_v16  ;;  %272 = vmatpush.msra.mxu1 %v212_v17 }
  0x1f   : > { %418 = vmatmul.msk.f32.vlgmr.msra.gmra.mxu0 %vm233_vm0, %v210_v18  ;;  %419 = vmatmul.msk.f32.vlgmr.msra.gmra.mxu1 %vm233_vm0, %v210_v18 }
  0x80   : > { %v231_v19 = vpop.permute.xlu0 %230 }
  0x9c   : > { %v254_v20 = vpop.f32.mrf.mxu0  ;;  %v274_v21 = vpop.f32.mrf.mxu1 }
  0x9d   : > { %v255_v22 = vadd.f32 %v254_v20, %v231_v19  ;;  %v275_v23 = vadd.f32 %v274_v21, %v231_v19 }
  0x9f   : > { %v420_v24 = vmul.f32 -1.442695, %v255_v22  ;;  %v421_v25 = vmul.f32 -1.442695, %v275_v23 }
  0xa1   : > { %452 = vpow2.f32 %v420_v24 }
  0xa2   : > { %454 = vpow2.f32 %v421_v25 }
  0xa7   : > { %v453_v26 = vpop.eup %452 }
  0xa8   : > { %v455_v27 = vpop.eup %454  ;;  %v283_v28 = vadd.f32 1.0, %v453_v26 }
  0xa9   : > { %v284_v29 = vadd.f32 1.0, %v455_v27 }
  0xaa   : > { %456 = vrcp.f32 %v283_v28  ;;  %vm290_vm3 = vweird.f32 %v283_v28  ;;  %v296_v41 = vand.u32 2147483648, %v283_v28  ;;  %v294_v43 = vand.u32 2147483647, %v283_v28 }
  0xab   : > { %458 = vrcp.f32 %v284_v29  ;;  %v311_v37 = vand.u32 2147483648, %v284_v29  ;;  %v309_v39 = vand.u32 2147483647, %v284_v29  ;;  %vm305_vm5 = vweird.f32 %v284_v29 }
  0xac   : > { %v297_v48 = vor.u32 1.1754944e-38, %v296_v41  ;;  %vm295_vm9 = vcmp.eq.f32.partialorder %v294_v43, 8.507059e+37 }
  0xad   : > { %v312_v45 = vor.u32 1.1754944e-38, %v311_v37  ;;  %vm310_vm7 = vcmp.eq.f32.partialorder %v309_v39, 8.507059e+37 }
  0xb0   : > { %v457_v30 = vpop.eup %456 }
  0xb1   : > { %v459_v31 = vpop.eup %458  ;;  %v286_v32 = vmul.f32 %v457_v30, %v283_v28  ;;  %vm291_vm1 = vweird.f32 %v457_v30 }
  0xb2   : > { %v301_v33 = vmul.f32 %v459_v31, %v284_v29  ;;  %vm306_vm2 = vweird.f32 %v459_v31  ;;  %vm535_vm4 = vmor %vm290_vm3, %vm291_vm1 }
  0xb3   : > { %v287_v34 = vsub.f32 1.0, %v286_v32  ;;  %vm307_vm6 = vmor %vm305_vm5, %vm306_vm2 }
  0xb4   : > { %v302_v35 = vsub.f32 1.0, %v301_v33 }
  0xb5   : > { %v288_v36 = vmul.f32 %v457_v30, %v287_v34 }
  0xb6   : > { %v303_v38 = vmul.f32 %v459_v31, %v302_v35 }
  0xb7   : > { %v289_v40 = vadd.f32 %v457_v30, %v288_v36 }
  0xb8   : > { %v304_v44 = vadd.f32 %v459_v31, %v303_v38 }
  0xb9   : > { %v293_v46 = vsel %vm535_vm4, %v457_v30, %v289_v40 }
  0xba   : > { %v308_v47 = vsel %vm307_vm6, %v459_v31, %v304_v44  ;;  %v298_v51 = vsel %vm295_vm9, %v297_v48, %v293_v46 }
  0xbb   : > { %v313_v49 = vsel %vm310_vm7, %v312_v45, %v308_v47 }
  0xbc   : > { %v317_v50 = vrot.slane %v313_v49, 6 }
  0xbe   : > { %v319_v52 = vsel %vm318_vm8, %v298_v51, %v317_v50 }
  0xbf   : > { %321 = vst [vmem:[%s208_s27] sm:$0xf] %v319_v52 }
  0xc0 PF: > { %s13_s14 = sadd.s32 1, %s482_s14   ;;  %s560_s12 = smov %s478_s13 }
  0xc1   : > { %p10_p5 = scmp.ge.s32.totalorder %s13_s14, 6   ;;  %s561_s13 = smov %s563_s15 }
  0xc3   :  { %12 = sbr.rel (!%p10_p5) target bundleno = 2 (0x2), region = 62 }

// kernel: mul.22
= control target key start
LH: loop header
LB: loop body
LE: loop exit
PB: predicated region body
PF: predicated region fallthrough
CT: control target
= control target key end

     0   :  { %3 = vsyncpa [#allocation1], 0  ;;  %s50_s13 = smov [#allocation0]   ;;  %s75_s0 = inlined_call_operand.vmem [shape: f32[2,8], index: 0, kind: input, shape index: {}]   ;;  %s76_s1 = inlined_call_operand.vmem [shape: f32[2,8], index: 1, kind: input, shape index: {}]   ;;  %s77_s2 = inlined_call_operand.hbm [shape: f32[2,8], index: 2, kind: output, shape index: {}]  }
   0x1   :  { %v4_v0 = vld [vmem:[%s75_s0] sm:$0x3]  ;;  %s16_s2 = sshll.u32 %s77_s2, 4  ;;  %s14_s14 = sshll.u32 %s50_s13, 4  ;;  %s17_s2 = int_to_ptr.hbm [resolvable:$true] %s16_s2  ;;  %s15_s14 = int_to_ptr.vmem [resolvable:$true] %s14_s14 }
   0x2   :  { %v5_v1 = vld [vmem:[%s76_s1] sm:$0x3] }
   0x3   :  { %v8_v2 = vmul.f32 %v5_v1, %v4_v0 }
   0x5   :  { %10 = vst [vmem:[#allocation0] sm:$0x3] %v8_v2 }
   0x6   :  { %19 = dma.vmem_to_hbm [thread:$0]  %s15_s14, 32, %s17_s2, [#allocation1]  }
   0x7   :  { %48 = dma.done.wait [#allocation1], 32  }
   0x8   :  { %49 = vsyncadd [#allocation1], 4294967264 }
   0x9   :  { %22 = vsyncpa [#allocation1], 1 }

// kernel: forward.5
= control target key start
LH: loop header
LB: loop body
LE: loop exit
PB: predicated region body
PF: predicated region fallthrough
CT: control target
= control target key end

     0   :  { %7 = vsyncpa [#allocation3], 0  ;;  %s609_s0 = inlined_call_operand.vmem [shape: bf16[2,8,64], index: 0, kind: input, shape index: {}]   ;;  %s610_s1 = inlined_call_operand.vmem [shape: bf16[2,8,64], index: 1, kind: input, shape index: {}]   ;;  %s611_s2 = inlined_call_operand.hbm [shape: f32[2,8,8], index: 2, kind: output, shape index: {}]  }
   0x1   :  { %9 = vsyncpa [#allocation3 + $0x1], 0  ;;  %s504_s9 = smov 0   ;;  %s506_s10 = smov 0  }
   0x2   :  { %s508_s11 = smov 0   ;;  %s510_s12 = smov 0  }
   0x3   :  { %s512_s13 = smov 0   ;;  %s514_s14 = smov 0  }
   0x4 LB: > { %s338_s15 = sadd.s32 4294967295, %s486_s14   ;;  %s339_s16 = sadd.s32 4294967294, %s486_s14   ;;  %s486_s14 = sphi %s514_s14, %s15_s14   ;;  %s482_s13 = sphi %s512_s13, %s618_s13   ;;  %s478_s12 = sphi %s510_s12, %s617_s12   ;;  %s474_s11 = sphi %s508_s11, %s616_s11   ;;  %s470_s10 = sphi %s506_s10, %s615_s10   ;;  %s466_s9 = sphi %s504_s9, %s614_s9  }
   0x5   : > { %s27_s17 = sadd.s32 1, %s482_s13  ;;  %s90_s18 = sadd.s32 1, %s474_s11 }
   0x6   : > { %p29_p0 = scmp.ge.s32.totalorder %s27_s17, 2  ;;  %p100_p1 = scmp.ne.s32.totalorder %s474_s11, %s470_s10 }
   0x7   : > { %p101_p2 = scmp.eq.s32.totalorder %s338_s15, 1  ;;  %p106_p3 = scmp.ne.s32.totalorder %s470_s10, %s466_s9 }
   0x8   : > { %s620_s17 = smov (%p29_p0, %s27_s17), 0  ;;  %p107_p5 = scmp.eq.s32.totalorder %s339_s16, 1 }
   0x9   : > { %p544_p4 = por %p101_p2, %p100_p1  ;;  %s85_s20 = ssub.s32 %s482_s13, %s620_s17 }
   0xa   : > { %p342_p6 = scmp.ge.s32.totalorder %s486_s14, 1  ;;  %p88_p7 = scmp.eq.s32.totalorder %s85_s20, 0 }
   0xb   : > { %p551_p8 = por %p107_p5, %p106_p3  ;;  %p142_p9 = scmp.lt.s32.totalorder %s486_s14, 3 }
   0xc   : > { %s557_s22 = scalar_select %p88_p7, %s474_s11, %s90_s18  }
   0xd   : > { %p143_p10 = pnand %p342_p6, %p142_p9 }
   0xe   : > { %p170_p11 = scmp.lt.s32.totalorder (!%p143_p10), %s478_s12, 1  ;;  %s167_s3 = sand.u32 (!%p143_p10), 1, %s470_s10  }
   0xf   : > { %146 = sbr.rel (%p143_p10) target bundleno = 175 (0xaf), region = 28  ;;  %s343_s4 = sshll.u32 (!%p143_p10), %s167_s3, 3 }
  0x10   : > { %s349_s5 = sshll.u32 (!%p143_p10), %s478_s12, 3  ;;  %s169_s15 = scalar_lea.vmem (!%p143_p10), [#allocation2], %s343_s4 }
  0x11   : > { %s250_s8 = scalar_lea.hbm (!%p143_p10), %s611_s2, %s349_s5  ;;  %s252_s16 = sshll.u32 (!%p143_p10), %s169_s15, 4  ;;  %s253_s16 = int_to_ptr.vmem [resolvable:$true] %s252_s16 }
  0x12   : > { %s254_s18 = sshll.u32 (!%p143_p10), %s250_s8, 4  ;;  %s428_s26 = scalar_lea.hbm (!%p143_p10), %s611_s2, 16  ;;  %s255_s18 = int_to_ptr.hbm [resolvable:$true] %s254_s18 }
  0x13   : > { %s422_s20 = sshra.s32 (!%p143_p10), %s255_s18, 4  ;;  %s423_s20 = int_to_ptr.hbm [resolvable:$true] %s422_s20 }
  0x14   : > { %s171_s23 = scalar_select %p170_p11, %s478_s12, 1  ;;  %vm185_vm0 = vcmask 523264   ;;  %v488_v10 = vmov 1065369472   ;;  %vm236_vm1 = vcmask 64512  }
  0x15   : > { %s239_s12 = scalar_lea.sflag [#allocation3], %s167_s3  ;;  %p429_p1 = scmp.lt.s32.totalorder %s423_s20, %s611_s2 }
  0x16   : > { %s344_s24 = sshll.u32 %s171_s23, 2  ;;  %s424_s23 = scalar_lea.hbm %s423_s20, 8 }
  0x17   : > { %s180_s27 = scalar_lea.vmem %s610_s1, %s344_s24  ;;  %s173_s30 = scalar_lea.vmem %s609_s0, %s344_s24 }
  0x18   : > { %v184_v0 = vld [vmem:[%s180_s27] sm:$0xf]  ;;  %p425_p12 = scmp.ne.s32.totalorder %s423_s20, %s424_s23  ;;  %p430_p2 = scmp.lt.s32.totalorder %s428_s26, %s424_s23 }
  0x19   : > { %v183_v1 = vld [vmem:[%s173_s30] sm:$0xf]  ;;  %v190_v2 = vsel %vm185_vm0, %v184_v0, 0  ;;  %v205_v3 = vunpack.c.l.bf16 %v184_v0 }
  0x1a   : > { %v227_v4 = vunpack.c.l.bf16 %v183_v1  ;;  %199 = vmatpush.bf16.xpose.msra.mxu0 %v190_v2  ;;  %p426_p13 = pnand %p425_p12, %p544_p4  ;;  %p431_p3 = por %p430_p2, %p429_p1 }
  0x1b   : > { %v206_v5 = vmul.f32 %v205_v3, %v205_v3 }
  0x1c   : > { %v228_v6 = vmul.f32 %v227_v4, %v227_v4  ;;  %p427_p0 = pneg %p426_p13 }
  0x1d   : > { %v207_v7 = vpack.c.bf16 %v206_v5, %v206_v5 }
  0x1e   : > { %v229_v8 = vsel %vm185_vm0, %v228_v6, 0.0  ;;  %p432_p5 = pnand %p431_p3, %p427_p0 }
  0x1f   : > { %230 = vadd.xlane.f32.xlu0 %v229_v8  ;;  %v212_v9 = vsel %vm185_vm0, %v207_v7, 0 }
  0x20   : > { %221 = vmatpush.bf16.xpose.msra.mxu1 %v212_v9 }
  0x21   : > { %346 = vmatmul.msk.bf16.vlgmr.msra.gmra.mxu0 %vm185_vm0, %v183_v1 }
  0x27   : > { %347 = vmatmul.msk.bf16.vlgmr.msra.gmra.mxu1 %vm185_vm0, %v488_v10 }
  0x92   : > { %v231_v12 = vpop.xlane.xlu0 %230 }
  0x9e   : > { %v201_v11 = vpop.f32.mrf.mxu0 }
  0x9f   : > { %v233_v13 = vmul.f32 2.0, %v201_v11 }
  0xa4   : > { %v223_v14 = vpop.f32.mrf.mxu1 }
  0xa5   : > { %v232_v15 = vadd.f32 %v231_v12, %v223_v14 }
  0xa6   : > { %v203_v16 = vpop.f32.mrf.mxu0 }
  0xa7   : > { %v234_v17 = vsub.f32 %v232_v15, %v233_v13 }
  0xa9   : > { %v235_v18 = vmax.f32 %v234_v17, 0.0 }
  0xab   : > { %237 = vst.msk [vmem:[%s169_s15] sm:$0xff] %vm236_vm1, %v235_v18 }
  0xac   : > { %v225_v19 = vpop.f32.mrf.mxu1 }
  0xad   : > { %435 = shalt.err (!%p432_p5)
}
  0xae   : > { %352 = dma.vmem_to_hbm [thread:$0]  (%p544_p4), %s253_s16, 128, %s255_s18, %s239_s12  }
  0xaf PF: > { %p358_p6 = scmp.ge.s32.totalorder %s486_s14, 2  ;;  %s266_s29 = sand.u32 1, %s466_s9  }
  0xb0   : > { %s267_s30 = scalar_lea.sflag [#allocation3], %s266_s29 }
  0xb1   : > { %p355_p7 = pnand %p358_p6, %p551_p8 }
  0xb3   : > { %p356_p9 = pneg %p355_p7 }
  0xb5   : > { %461 = dma.done.wait (%p356_p9), %s267_s30, 128  }
  0xb6   : > { %463 = vsyncadd (%p356_p9), %s267_s30, 4294967168  ;;  %s15_s14 = sadd.s32 1, %s486_s14   ;;  %s614_s9 = smov %s470_s10 }
  0xb7   : > { %p12_p10 = scmp.ge.s32.totalorder %s15_s14, 4   ;;  %s615_s10 = smov %s474_s11 }
  0xb8   : > { %s616_s11 = smov %s557_s22  ;;  %s617_s12 = smov %s482_s13 }
  0xb9   : > { %s618_s13 = smov %s620_s17  ;;  %14 = sbr.rel (!%p12_p10) target bundleno = 4 (0x4), region = 66 }
  0xbe   :  { %273 = vsyncpa [#allocation3], 1 }
  0xbf   :  { %275 = vsyncpa [#allocation3 + $0x1], 1 }

// kernel: forward.4
= control target key start
LH: loop header
LB: loop body
LE: loop exit
PB: predicated region body
PF: predicated region fallthrough
CT: control target
= control target key end

     0   :  { %8 = vsyncpa [#allocation4], 0  ;;  %s2015_s0 = inlined_call_operand.vmem [shape: s32[4,64], index: 0, kind: input, shape index: {}]   ;;  %s2016_s1 = inlined_call_operand.vmem [shape: f32[4,64], index: 1, kind: input, shape index: {}]   ;;  %s2017_s2 = inlined_call_operand.vmem [shape: f32[4,256,128], index: 2, kind: input, shape index: {}]   ;;  %s2018_s3 = inlined_call_operand.vmem [shape: f32[4,16,128], index: 3, kind: output, shape index: {}]  }
   0x1   :  { %9 = vsyncpa [#allocation6], 0  ;;  %s1619_s12 = smov 0   ;;  %s1621_s13 = smov 0  }
   0x2   :  { %s1623_s14 = smov 0  }
   0x3 LB: > { %s1405_s15 = sadd.s32 4294967295, %s1595_s14   ;;  %s27_s16 = sadd.s32 1, %s1591_s13  ;;  %s1595_s14 = sphi %s1623_s14, %s15_s14   ;;  %s1591_s13 = sphi %s1621_s13, %s2021_s13   ;;  %s1587_s12 = sphi %s1619_s12, %s2020_s12  }
   0x4   : > { %p29_p0 = scmp.ge.s32.totalorder %s27_s16, 4  ;;  %p1407_p1 = scmp.ge.s32.totalorder %s1595_s14, 1 }
   0x5   : > { %p128_p2 = scmp.lt.s32.totalorder %s1595_s14, 5  ;;  %p1640_p4 = scmp.eq.s32.totalorder %s1405_s15, 0 }
   0x6   : > { %s2023_s16 = smov (%p29_p0, %s27_s16), 0  ;;  %s140_s20 = sshll.u32 %s2015_s0, 4  ;;  %s141_s20 = int_to_ptr.vmem [resolvable:$true] %s140_s20 }
   0x7   : > { %p129_p3 = pnand %p1407_p1, %p128_p2  ;;  %s150_s23 = sshll.u32 %s2016_s1, 4  ;;  %s151_s23 = int_to_ptr.vmem [resolvable:$true] %s150_s23 }
   0x8   : > { %s1597_s24 = smov [#allocation3]   ;;  %s1598_s25 = smov [#allocation5]  }
   0x9   : > { %p1494_p5 = pneg %p129_p3 }
   0xa   : > { %171 = sbr.rel (%p129_p3) target bundleno = 312 (0x138), region = 32 }
   0xb   : > { %p1495_p6 = pnand %p1640_p4, %p1494_p5 }
   0xd   : > { %1497 = dma.vmem_to_smem (!%p1495_p6), %s141_s20, 64, %s1597_s24, [#allocation4]  }
   0xe   : > { %1500 = dma.vmem_to_smem (!%p1495_p6), %s151_s23, 64, %s1598_s25, [#allocation6]  }
   0xf   : > { %1578 = dma.done.wait (%p1640_p4), [#allocation4], 64  }
  0x10   : > { %1580 = vsyncadd (%p1640_p4), [#allocation4], 4294967232 }
  0x11   : > { %1582 = dma.done.wait (%p1640_p4), [#allocation6], 64  }
  0x12   : > { %1584 = vsyncadd (%p1640_p4), [#allocation6], 4294967232 }
  0x13   : > { %183 = sfence }
  0x14   : > { %p206_p7 = scmp.lt.s32.totalorder %s1587_s12, 3  ;;  %s1662_s26 = sshll.u32 %s1587_s12, 7 }
  0x15   : > { %s229_s27 = sld [smem:[#allocation5 + %s1662_s26]]  ;;  %s242_s28 = sadd.s32 1, %s1662_s26 }
  0x16   : > { %s2025_s12 = smov (!%p206_p7, %s1587_s12), 3  ;;  %s230_s29 = sld [smem:[#allocation3 + %s1662_s26]] }
  0x17   : > { %s257_s30 = sadd.s32 2, %s1662_s26  ;;  %s1484_s4 = sshll.u32 %s2025_s12, 8 }
  0x18   : > { %s243_s5 = sld [smem:[#allocation5 + %s242_s28]]  ;;  %s1675_s8 = scalar_lea.vmem %s2017_s2, %s1484_s4 }
  0x19   : > { %s244_s9 = sld [smem:[#allocation3 + %s242_s28]]  ;;  %s272_s11 = sadd.s32 3, %s1662_s26 }
  0x1a   : > { %s258_s10 = sld [smem:[#allocation5 + %s257_s30]]  ;;  %s290_s17 = sadd.s32 4, %s1662_s26 }
  0x1b   : > { %s259_s15 = sld [smem:[#allocation3 + %s257_s30]]  ;;  %v233_v0 = vstv %s229_s27  ;;  %s304_s19 = sadd.s32 5, %s1662_s26 }
  0x1c   : > { %s1679_s18 = sld [smem:[#allocation5 + %s272_s11]]  ;;  %s231_s20 = scalar_lea.vmem %s1675_s8, %s230_s29 }
  0x1d   : > { %s274_s21 = sld [smem:[#allocation3 + %s272_s11]]  ;;  %v232_v1 = vld [vmem:[%s231_s20] sm:$0x1]  ;;  %s319_s23 = sadd.s32 6, %s1662_s26 }
  0x1e   : > { %v247_v2 = vstv %s243_s5  ;;  %s1683_s22 = sld [smem:[#allocation5 + %s290_s17]]  ;;  %v234_v3 = vmul.f32 %v233_v0, %v232_v1  ;;  %s334_s28 = sadd.s32 7, %s1662_s26 }
  0x1f   : > { %s245_s24 = scalar_lea.vmem %s1675_s8, %s244_s9  ;;  %s292_s25 = sld [smem:[#allocation3 + %s290_s17]] }
  0x20   : > { %v246_v4 = vld [vmem:[%s245_s24] sm:$0x1]  ;;  %v262_v5 = vstv %s258_s10  ;;  %s1687_s27 = sld [smem:[#allocation5 + %s304_s19]]  ;;  %s351_s5 = sadd.s32 8, %s1662_s26 }
  0x21   : > { %v248_v6 = vmul.f32 %v247_v2, %v246_v4  ;;  %s260_s29 = scalar_lea.vmem %s1675_s8, %s259_s15  ;;  %s306_s30 = sld [smem:[#allocation3 + %s304_s19]] }
  0x22   : > { %v261_v7 = vld [vmem:[%s260_s29] sm:$0x1]  ;;  %v277_v8 = vstv %s1679_s18  ;;  %s1692_s4 = sld [smem:[#allocation5 + %s319_s23]]  ;;  %s365_s10 = sadd.s32 9, %s1662_s26 }
  0x23   : > { %v249_v9 = vadd.f32 %v248_v6, %v234_v3  ;;  %v263_v10 = vmul.f32 %v262_v5, %v261_v7  ;;  %s275_s6 = scalar_lea.vmem %s1675_s8, %s274_s21  ;;  %s321_s7 = sld [smem:[#allocation3 + %s319_s23]] }
  0x24   : > { %v276_v11 = vld [vmem:[%s275_s6] sm:$0x1]  ;;  %v295_v12 = vstv %s1683_s22  ;;  %s1697_s9 = sld [smem:[#allocation5 + %s334_s28]]  ;;  %s380_s18 = sadd.s32 10, %s1662_s26 }
  0x25   : > { %v264_v13 = vadd.f32 %v263_v10, %v249_v9  ;;  %v278_v14 = vmul.f32 %v277_v8, %v276_v11  ;;  %s293_s11 = scalar_lea.vmem %s1675_s8, %s292_s25  ;;  %s336_s15 = sld [smem:[#allocation3 + %s334_s28]] }
  0x26   : > { %v294_v15 = vld [vmem:[%s293_s11] sm:$0x1]  ;;  %v309_v16 = vstv %s1687_s27  ;;  %s1702_s17 = sld [smem:[#allocation5 + %s351_s5]]  ;;  %s395_s22 = sadd.s32 11, %s1662_s26 }
  0x27   : > { %v279_v17 = vadd.f32 %v278_v14, %v264_v13  ;;  %v296_v18 = vmul.f32 %v295_v12, %v294_v15  ;;  %s307_s19 = scalar_lea.vmem %s1675_s8, %s306_s30  ;;  %s353_s20 = sld [smem:[#allocation3 + %s351_s5]] }
  0x28   : > { %v308_v19 = vld [vmem:[%s307_s19] sm:$0x1]  ;;  %v324_v20 = vstv %s1692_s4  ;;  %s1707_s21 = sld [smem:[#allocation5 + %s365_s10]]  ;;  %s412_s27 = sadd.s32 12, %s1662_s26 }
  0x29   : > { %280 = vst [vmem:[#allocation2] sm:$0x1] %v279_v17  ;;  %v310_v21 = vmul.f32 %v309_v16, %v308_v19  ;;  %s322_s23 = scalar_lea.vmem %s1675_s8, %s321_s7  ;;  %s367_s24 = sld [smem:[#allocation3 + %s365_s10]] }
  0x2a   : > { %v323_v22 = vld [vmem:[%s322_s23] sm:$0x1]  ;;  %v339_v23 = vstv %s1697_s9  ;;  %s1712_s25 = sld [smem:[#allocation5 + %s380_s18]]  ;;  %s426_s4 = sadd.s32 13, %s1662_s26 }
  0x2b   : > { %v311_v24 = vadd.f32 %v310_v21, %v296_v18  ;;  %v325_v25 = vmul.f32 %v324_v20, %v323_v22  ;;  %s337_s28 = scalar_lea.vmem %s1675_s8, %s336_s15  ;;  %s382_s29 = sld [smem:[#allocation3 + %s380_s18]] }
  0x2c   : > { %v338_v26 = vld [vmem:[%s337_s28] sm:$0x1]  ;;  %v356_v27 = vstv %s1702_s17  ;;  %s1717_s30 = sld [smem:[#allocation5 + %s395_s22]]  ;;  %s441_s9 = sadd.s32 14, %s1662_s26 }
  0x2d   : > { %v326_v28 = vadd.f32 %v325_v25, %v311_v24  ;;  %v340_v29 = vmul.f32 %v339_v23, %v338_v26  ;;  %s354_s5 = scalar_lea.vmem %s1675_s8, %s353_s20  ;;  %s397_s6 = sld [smem:[#allocation3 + %s395_s22]] }
  0x2e   : > { %v355_v30 = vld [vmem:[%s354_s5] sm:$0x1]  ;;  %v370_v31 = vstv %s1707_s21  ;;  %s1722_s7 = sld [smem:[#allocation5 + %s412_s27]]  ;;  %s456_s17 = sadd.s32 15, %s1662_s26 }
  0x2f   : > { %v341_v32 = vadd.f32 %v340_v29, %v326_v28  ;;  %v357_v33 = vmul.f32 %v356_v27, %v355_v30  ;;  %s368_s10 = scalar_lea.vmem %s1675_s8, %s367_s24  ;;  %s414_s11 = sld [smem:[#allocation3 + %s412_s27]] }
  0x30   : > { %v369_v34 = vld [vmem:[%s368_s10] sm:$0x1]  ;;  %v385_v35 = vstv %s1712_s25  ;;  %s1727_s15 = sld [smem:[#allocation5 + %s426_s4]]  ;;  %s473_s21 = sadd.s32 16, %s1662_s26 }
  0x31   : > { %342 = vst [vmem:[#allocation2 + $0x1] sm:$0x1] %v341_v32  ;;  %v371_v36 = vmul.f32 %v370_v31, %v369_v34  ;;  %s383_s18 = scalar_lea.vmem %s1675_s8, %s382_s29  ;;  %s428_s19 = sld [smem:[#allocation3 + %s426_s4]] }
  0x32   : > { %v384_v37 = vld [vmem:[%s383_s18] sm:$0x1]  ;;  %v400_v38 = vstv %s1717_s30  ;;  %s1732_s20 = sld [smem:[#allocation5 + %s441_s9]]  ;;  %s487_s25 = sadd.s32 17, %s1662_s26 }
  0x33   : > { %v372_v39 = vadd.f32 %v371_v36, %v357_v33  ;;  %v386_v40 = vmul.f32 %v385_v35, %v384_v37  ;;  %s398_s22 = scalar_lea.vmem %s1675_s8, %s397_s6  ;;  %s443_s23 = sld [smem:[#allocation3 + %s441_s9]] }
  0x34   : > { %v399_v41 = vld [vmem:[%s398_s22] sm:$0x1]  ;;  %v417_v42 = vstv %s1722_s7  ;;  %s1737_s24 = sld [smem:[#allocation5 + %s456_s17]]  ;;  %s502_s30 = sadd.s32 18, %s1662_s26 }
  0x35   : > { %v387_v43 = vadd.f32 %v386_v40, %v372_v39  ;;  %v401_v44 = vmul.f32 %v400_v38, %v399_v41  ;;  %s415_s27 = scalar_lea.vmem %s1675_s8, %s414_s11  ;;  %s458_s28 = sld [smem:[#allocation3 + %s456_s17]] }
  0x36   : > { %v416_v45 = vld [vmem:[%s415_s27] sm:$0x1]  ;;  %v431_v46 = vstv %s1727_s15  ;;  %s1742_s29 = sld [smem:[#allocation5 + %s473_s21]]  ;;  %s517_s7 = sadd.s32 19, %s1662_s26 }
  0x37   : > { %v402_v47 = vadd.f32 %v401_v44, %v387_v43  ;;  %v418_v48 = vmul.f32 %v417_v42, %v416_v45  ;;  %s429_s4 = scalar_lea.vmem %s1675_s8, %s428_s19  ;;  %s475_s5 = sld [smem:[#allocation3 + %s473_s21]] }
  0x38   : > { %v430_v49 = vld [vmem:[%s429_s4] sm:$0x1]  ;;  %v446_v50 = vstv %s1732_s20  ;;  %s1747_s6 = sld [smem:[#allocation5 + %s487_s25]]  ;;  %s534_s15 = sadd.s32 20, %s1662_s26 }
  0x39   : > { %403 = vst [vmem:[#allocation2 + $0x2] sm:$0x1] %v402_v47  ;;  %v432_v51 = vmul.f32 %v431_v46, %v430_v49  ;;  %s444_s9 = scalar_lea.vmem %s1675_s8, %s443_s23  ;;  %s489_s10 = sld [smem:[#allocation3 + %s487_s25]] }
  0x3a   : > { %v445_v52 = vld [vmem:[%s444_s9] sm:$0x1]  ;;  %v461_v53 = vstv %s1737_s24  ;;  %s1752_s11 = sld [smem:[#allocation5 + %s502_s30]]  ;;  %s548_s20 = sadd.s32 21, %s1662_s26 }
  0x3b   : > { %v433_v54 = vadd.f32 %v432_v51, %v418_v48  ;;  %v447_v55 = vmul.f32 %v446_v50, %v445_v52  ;;  %s459_s17 = scalar_lea.vmem %s1675_s8, %s458_s28  ;;  %s504_s18 = sld [smem:[#allocation3 + %s502_s30]] }
  0x3c   : > { %v460_v56 = vld [vmem:[%s459_s17] sm:$0x1]  ;;  %v478_v57 = vstv %s1742_s29  ;;  %s1757_s19 = sld [smem:[#allocation5 + %s517_s7]]  ;;  %s563_s24 = sadd.s32 22, %s1662_s26 }
  0x3d   : > { %v448_v58 = vadd.f32 %v447_v55, %v433_v54  ;;  %v462_v59 = vmul.f32 %v461_v53, %v460_v56  ;;  %s476_s21 = scalar_lea.vmem %s1675_s8, %s475_s5  ;;  %s519_s22 = sld [smem:[#allocation3 + %s517_s7]] }
  0x3e   : > { %v477_v60 = vld [vmem:[%s476_s21] sm:$0x1]  ;;  %v492_v61 = vstv %s1747_s6  ;;  %s1762_s23 = sld [smem:[#allocation5 + %s534_s15]]  ;;  %s578_s29 = sadd.s32 23, %s1662_s26 }
  0x3f   : > { %v463_v62 = vadd.f32 %v462_v59, %v448_v58  ;;  %v479_v63 = vmul.f32 %v478_v57, %v477_v60  ;;  %s490_s25 = scalar_lea.vmem %s1675_s8, %s489_s10  ;;  %s536_s27 = sld [smem:[#allocation3 + %s534_s15]]  ;;  %v1199_v60 = vlaneseq }
  0x40   : > { %v491_v0 = vld [vmem:[%s490_s25] sm:$0x1]  ;;  %v507_v1 = vstv %s1752_s11  ;;  %s1767_s28 = sld [smem:[#allocation5 + %s548_s20]]  ;;  %s595_s6 = sadd.s32 24, %s1662_s26 }
  0x41   : > { %464 = vst [vmem:[#allocation2 + $0x3] sm:$0x1] %v463_v62  ;;  %v493_v2 = vmul.f32 %v492_v61, %v491_v0  ;;  %s505_s30 = scalar_lea.vmem %s1675_s8, %s504_s18  ;;  %s550_s4 = sld [smem:[#allocation3 + %s548_s20]] }
  0x42   : > { %v506_v3 = vld [vmem:[%s505_s30] sm:$0x1]  ;;  %v522_v4 = vstv %s1757_s19  ;;  %s1772_s5 = sld [smem:[#allocation5 + %s563_s24]]  ;;  %s609_s11 = sadd.s32 25, %s1662_s26 }
  0x43   : > { %v494_v5 = vadd.f32 %v493_v2, %v479_v63  ;;  %v508_v6 = vmul.f32 %v507_v1, %v506_v3  ;;  %s520_s7 = scalar_lea.vmem %s1675_s8, %s519_s22  ;;  %s565_s9 = sld [smem:[#allocation3 + %s563_s24]] }
  0x44   : > { %v521_v7 = vld [vmem:[%s520_s7] sm:$0x1]  ;;  %v539_v8 = vstv %s1762_s23  ;;  %s1777_s10 = sld [smem:[#allocation5 + %s578_s29]]  ;;  %s624_s19 = sadd.s32 26, %s1662_s26 }
  0x45   : > { %v509_v9 = vadd.f32 %v508_v6, %v494_v5  ;;  %v523_v10 = vmul.f32 %v522_v4, %v521_v7  ;;  %s537_s15 = scalar_lea.vmem %s1675_s8, %s536_s27  ;;  %s580_s17 = sld [smem:[#allocation3 + %s578_s29]]  ;;  %v1858_v4 = vand.u32 127, %v1199_v60 }
  0x46   : > { %v538_v11 = vld [vmem:[%s537_s15] sm:$0x1]  ;;  %v553_v12 = vstv %s1767_s28  ;;  %s1782_s18 = sld [smem:[#allocation5 + %s595_s6]]  ;;  %s639_s23 = sadd.s32 27, %s1662_s26 }
  0x47   : > { %v524_v13 = vadd.f32 %v523_v10, %v509_v9  ;;  %v540_v14 = vmul.f32 %v539_v8, %v538_v11  ;;  %s551_s20 = scalar_lea.vmem %s1675_s8, %s550_s4  ;;  %s597_s21 = sld [smem:[#allocation3 + %s595_s6]]  ;;  %vm1201_vm0 = vcmp.lt.s32.totalorder %v1858_v4, 64 }
  0x48   : > { %v552_v15 = vld [vmem:[%s551_s20] sm:$0x1]  ;;  %v568_v16 = vstv %s1772_s5  ;;  %s1787_s22 = sld [smem:[#allocation5 + %s609_s11]]  ;;  %s656_s28 = sadd.s32 28, %s1662_s26 }
  0x49   : > { %525 = vst [vmem:[#allocation2 + $0x4] sm:$0x1] %v524_v13  ;;  %v554_v17 = vmul.f32 %v553_v12, %v552_v15  ;;  %s566_s24 = scalar_lea.vmem %s1675_s8, %s565_s9  ;;  %s611_s25 = sld [smem:[#allocation3 + %s609_s11]] }
  0x4a   : > { %v567_v18 = vld [vmem:[%s566_s24] sm:$0x1]  ;;  %v583_v19 = vstv %s1777_s10  ;;  %s1792_s27 = sld [smem:[#allocation5 + %s624_s19]]  ;;  %s670_s5 = sadd.s32 29, %s1662_s26 }
  0x4b   : > { %v555_v20 = vadd.f32 %v554_v17, %v540_v14  ;;  %v569_v21 = vmul.f32 %v568_v16, %v567_v18  ;;  %s581_s29 = scalar_lea.vmem %s1675_s8, %s580_s17  ;;  %s626_s30 = sld [smem:[#allocation3 + %s624_s19]] }
  0x4c   : > { %v582_v22 = vld [vmem:[%s581_s29] sm:$0x1]  ;;  %v600_v23 = vstv %s1782_s18  ;;  %s1797_s4 = sld [smem:[#allocation5 + %s639_s23]]  ;;  %s685_s10 = sadd.s32 30, %s1662_s26 }
  0x4d   : > { %v570_v24 = vadd.f32 %v569_v21, %v555_v20  ;;  %v584_v25 = vmul.f32 %v583_v19, %v582_v22  ;;  %s598_s6 = scalar_lea.vmem %s1675_s8, %s597_s21  ;;  %s641_s7 = sld [smem:[#allocation3 + %s639_s23]] }
  0x4e   : > { %v599_v26 = vld [vmem:[%s598_s6] sm:$0x1]  ;;  %v614_v27 = vstv %s1787_s22  ;;  %s1802_s9 = sld [smem:[#allocation5 + %s656_s28]]  ;;  %s700_s18 = sadd.s32 31, %s1662_s26 }
  0x4f   : > { %v585_v28 = vadd.f32 %v584_v25, %v570_v24  ;;  %v601_v29 = vmul.f32 %v600_v23, %v599_v26  ;;  %s612_s11 = scalar_lea.vmem %s1675_s8, %s611_s25  ;;  %s658_s15 = sld [smem:[#allocation3 + %s656_s28]] }
  0x50   : > { %v613_v30 = vld [vmem:[%s612_s11] sm:$0x1]  ;;  %v629_v31 = vstv %s1792_s27  ;;  %s1807_s17 = sld [smem:[#allocation5 + %s670_s5]]  ;;  %s717_s22 = sadd.s32 32, %s1662_s26 }
  0x51   : > { %586 = vst [vmem:[#allocation2 + $0x5] sm:$0x1] %v585_v28  ;;  %v615_v32 = vmul.f32 %v614_v27, %v613_v30  ;;  %s627_s19 = scalar_lea.vmem %s1675_s8, %s626_s30  ;;  %s672_s20 = sld [smem:[#allocation3 + %s670_s5]] }
  0x52   : > { %v628_v33 = vld [vmem:[%s627_s19] sm:$0x1]  ;;  %v644_v34 = vstv %s1797_s4  ;;  %s1812_s21 = sld [smem:[#allocation5 + %s685_s10]]  ;;  %s731_s27 = sadd.s32 33, %s1662_s26 }
  0x53   : > { %v616_v35 = vadd.f32 %v615_v32, %v601_v29  ;;  %v630_v36 = vmul.f32 %v629_v31, %v628_v33  ;;  %s642_s23 = scalar_lea.vmem %s1675_s8, %s641_s7  ;;  %s687_s24 = sld [smem:[#allocation3 + %s685_s10]] }
  0x54   : > { %v643_v37 = vld [vmem:[%s642_s23] sm:$0x1]  ;;  %v661_v38 = vstv %s1802_s9  ;;  %s1817_s25 = sld [smem:[#allocation5 + %s700_s18]]  ;;  %s746_s4 = sadd.s32 34, %s1662_s26 }
  0x55   : > { %v631_v39 = vadd.f32 %v630_v36, %v616_v35  ;;  %v645_v40 = vmul.f32 %v644_v34, %v643_v37  ;;  %s659_s28 = scalar_lea.vmem %s1675_s8, %s658_s15  ;;  %s702_s29 = sld [smem:[#allocation3 + %s700_s18]] }
  0x56   : > { %v660_v41 = vld [vmem:[%s659_s28] sm:$0x1]  ;;  %v675_v42 = vstv %s1807_s17  ;;  %s1822_s30 = sld [smem:[#allocation5 + %s717_s22]]  ;;  %s761_s9 = sadd.s32 35, %s1662_s26 }
  0x57   : > { %v646_v43 = vadd.f32 %v645_v40, %v631_v39  ;;  %v662_v44 = vmul.f32 %v661_v38, %v660_v41  ;;  %s673_s5 = scalar_lea.vmem %s1675_s8, %s672_s20  ;;  %s719_s6 = sld [smem:[#allocation3 + %s717_s22]] }
  0x58   : > { %v674_v45 = vld [vmem:[%s673_s5] sm:$0x1]  ;;  %v690_v46 = vstv %s1812_s21  ;;  %s1827_s7 = sld [smem:[#allocation5 + %s731_s27]]  ;;  %s778_s17 = sadd.s32 36, %s1662_s26 }
  0x59   : > { %647 = vst [vmem:[#allocation2 + $0x6] sm:$0x1] %v646_v43  ;;  %v676_v47 = vmul.f32 %v675_v42, %v674_v45  ;;  %s688_s10 = scalar_lea.vmem %s1675_s8, %s687_s24  ;;  %s733_s11 = sld [smem:[#allocation3 + %s731_s27]] }
  0x5a   : > { %v689_v48 = vld [vmem:[%s688_s10] sm:$0x1]  ;;  %v705_v49 = vstv %s1817_s25  ;;  %s1832_s15 = sld [smem:[#allocation5 + %s746_s4]]  ;;  %s792_s21 = sadd.s32 37, %s1662_s26 }
  0x5b   : > { %v677_v50 = vadd.f32 %v676_v47, %v662_v44  ;;  %v691_v51 = vmul.f32 %v690_v46, %v689_v48  ;;  %s703_s18 = scalar_lea.vmem %s1675_s8, %s702_s29  ;;  %s748_s19 = sld [smem:[#allocation3 + %s746_s4]] }
  0x5c   : > { %v704_v52 = vld [vmem:[%s703_s18] sm:$0x1]  ;;  %v722_v53 = vstv %s1822_s30  ;;  %s1837_s20 = sld [smem:[#allocation5 + %s761_s9]]  ;;  %s807_s25 = sadd.s32 38, %s1662_s26 }
  0x5d   : > { %v692_v54 = vadd.f32 %v691_v51, %v677_v50  ;;  %v706_v55 = vmul.f32 %v705_v49, %v704_v52  ;;  %s720_s22 = scalar_lea.vmem %s1675_s8, %s719_s6  ;;  %s763_s23 = sld [smem:[#allocation3 + %s761_s9]] }
  0x5e   : > { %v721_v56 = vld [vmem:[%s720_s22] sm:$0x1]  ;;  %v736_v57 = vstv %s1827_s7  ;;  %s1842_s24 = sld [smem:[#allocation5 + %s778_s17]]  ;;  %s822_s30 = sadd.s32 39, %s1662_s26 }
  0x5f   : > { %v707_v58 = vadd.f32 %v706_v55, %v692_v54  ;;  %v723_v59 = vmul.f32 %v722_v53, %v721_v56  ;;  %s734_s27 = scalar_lea.vmem %s1675_s8, %s733_s11  ;;  %s780_s28 = sld [smem:[#allocation3 + %s778_s17]] }
  0x60   : > { %v735_v61 = vld [vmem:[%s734_s27] sm:$0x1]  ;;  %v751_v62 = vstv %s1832_s15  ;;  %s1847_s29 = sld [smem:[#allocation5 + %s792_s21]]  ;;  %s839_s7 = sadd.s32 40, %s1662_s26 }
  0x61   : > { %708 = vst [vmem:[#allocation2 + $0x7] sm:$0x1] %v707_v58  ;;  %v737_v63 = vmul.f32 %v736_v57, %v735_v61  ;;  %s749_s4 = scalar_lea.vmem %s1675_s8, %s748_s19  ;;  %s794_s5 = sld [smem:[#allocation3 + %s792_s21]] }
  0x62   : > { %v750_v0 = vld [vmem:[%s749_s4] sm:$0x1]  ;;  %v766_v1 = vstv %s1837_s20  ;;  %s1852_s6 = sld [smem:[#allocation5 + %s807_s25]]  ;;  %s853_s15 = sadd.s32 41, %s1662_s26 }
  0x63   : > { %v738_v2 = vadd.f32 %v737_v63, %v723_v59  ;;  %v752_v3 = vmul.f32 %v751_v62, %v750_v0  ;;  %s764_s9 = scalar_lea.vmem %s1675_s8, %s763_s23  ;;  %s1856_s10 = sld [smem:[#allocation3 + %s807_s25]] }
  0x64   : > { %v765_v5 = vld [vmem:[%s764_s9] sm:$0x1]  ;;  %v783_v6 = vstv %s1842_s24  ;;  %s1861_s11 = sld [smem:[#allocation5 + %s822_s30]]  ;;  %s868_s20 = sadd.s32 42, %s1662_s26 }
  0x65   : > { %v753_v7 = vadd.f32 %v752_v3, %v738_v2  ;;  %v767_v8 = vmul.f32 %v766_v1, %v765_v5  ;;  %s781_s17 = scalar_lea.vmem %s1675_s8, %s780_s28  ;;  %s1865_s18 = sld [smem:[#allocation3 + %s822_s30]] }
  0x66   : > { %v782_v9 = vld [vmem:[%s781_s17] sm:$0x1]  ;;  %v797_v10 = vstv %s1847_s29  ;;  %s1868_s19 = sld [smem:[#allocation5 + %s839_s7]]  ;;  %s883_s24 = sadd.s32 43, %s1662_s26 }
  0x67   : > { %v768_v11 = vadd.f32 %v767_v8, %v753_v7  ;;  %v784_v12 = vmul.f32 %v783_v6, %v782_v9  ;;  %s795_s21 = scalar_lea.vmem %s1675_s8, %s794_s5  ;;  %s1872_s22 = sld [smem:[#allocation3 + %s839_s7]] }
  0x68   : > { %v1874_v13 = vld [vmem:[#allocation2] sm:$0xff]  ;;  %v812_v15 = vstv %s1852_s6  ;;  %s1878_s23 = sld [smem:[#allocation5 + %s853_s15]]  ;;  %s900_s29 = sadd.s32 44, %s1662_s26 }
  0x69   : > { %v796_v14 = vld [vmem:[%s795_s21] sm:$0x1]  ;;  %v1202_v16 = vmul.f32 %v1874_v13, %v1874_v13  ;;  %769 = vst [vmem:[#allocation2 + $0x8] sm:$0x1] %v768_v11  ;;  %s810_s25 = scalar_lea.vmem %s1675_s8, %s1856_s10  ;;  %s855_s27 = sld [smem:[#allocation3 + %s853_s15]] }
  0x6a   : > { %v798_v17 = vmul.f32 %v797_v10, %v796_v14  ;;  %v811_v18 = vld [vmem:[%s810_s25] sm:$0x1]  ;;  %v827_v19 = vstv %s1861_s11  ;;  %s1886_s28 = sld [smem:[#allocation5 + %s868_s20]]  ;;  %s914_s6 = sadd.s32 45, %s1662_s26 }
  0x6b   : > { %v1204_v20 = vsel %vm1201_vm0, %v1202_v16, 0.0  ;;  %v813_v22 = vmul.f32 %v812_v15, %v811_v18  ;;  %s825_s30 = scalar_lea.vmem %s1675_s8, %s1865_s18  ;;  %s870_s4 = sld [smem:[#allocation3 + %s868_s20]] }
  0x6c   : > { %v799_v21 = vadd.f32 %v798_v17, %v784_v12  ;;  %1206 = vadd.xlane.f32.xlu0 %v1204_v20  ;;  %v826_v23 = vld [vmem:[%s825_s30] sm:$0x1]  ;;  %v844_v24 = vstv %s1868_s19  ;;  %s1894_s5 = sld [smem:[#allocation5 + %s883_s24]]  ;;  %s929_s11 = sadd.s32 46, %s1662_s26 }
  0x6d   : > { %v828_v26 = vmul.f32 %v827_v19, %v826_v23  ;;  %s842_s7 = scalar_lea.vmem %s1675_s8, %s1872_s22  ;;  %s885_s9 = sld [smem:[#allocation3 + %s883_s24]] }
  0x6e   : > { %v814_v25 = vadd.f32 %v813_v22, %v799_v21  ;;  %v843_v27 = vld [vmem:[%s842_s7] sm:$0x1]  ;;  %v858_v28 = vstv %s1878_s23  ;;  %s1900_s10 = sld [smem:[#allocation5 + %s900_s29]]  ;;  %s944_s19 = sadd.s32 47, %s1662_s26 }
  0x6f   : > { %v845_v30 = vmul.f32 %v844_v24, %v843_v27  ;;  %s856_s15 = scalar_lea.vmem %s1675_s8, %s855_s27  ;;  %s902_s17 = sld [smem:[#allocation3 + %s900_s29]] }
  0x70   : > { %v829_v29 = vadd.f32 %v828_v26, %v814_v25  ;;  %v857_v31 = vld [vmem:[%s856_s15] sm:$0x1]  ;;  %v873_v32 = vstv %s1886_s28  ;;  %s1905_s18 = sld [smem:[#allocation5 + %s914_s6]]  ;;  %s961_s23 = sadd.s32 48, %s1662_s26 }
  0x71   : > { %v859_v33 = vmul.f32 %v858_v28, %v857_v31  ;;  %s871_s20 = scalar_lea.vmem %s1675_s8, %s870_s4  ;;  %s916_s21 = sld [smem:[#allocation3 + %s914_s6]] }
  0x72   : > { %830 = vst [vmem:[#allocation2 + $0x9] sm:$0x1] %v829_v29  ;;  %v872_v34 = vld [vmem:[%s871_s20] sm:$0x1]  ;;  %v888_v35 = vstv %s1894_s5  ;;  %s1910_s22 = sld [smem:[#allocation5 + %s929_s11]]  ;;  %s975_s28 = sadd.s32 49, %s1662_s26 }
  0x73   : > { %v860_v36 = vadd.f32 %v859_v33, %v845_v30  ;;  %v874_v37 = vmul.f32 %v873_v32, %v872_v34  ;;  %s886_s24 = scalar_lea.vmem %s1675_s8, %s885_s9  ;;  %s931_s25 = sld [smem:[#allocation3 + %s929_s11]] }
  0x74   : > { %v887_v38 = vld [vmem:[%s886_s24] sm:$0x1]  ;;  %v905_v39 = vstv %s1900_s10  ;;  %s1915_s27 = sld [smem:[#allocation5 + %s944_s19]]  ;;  %s990_s5 = sadd.s32 50, %s1662_s26 }
  0x75   : > { %v875_v40 = vadd.f32 %v874_v37, %v860_v36  ;;  %v889_v41 = vmul.f32 %v888_v35, %v887_v38  ;;  %s903_s29 = scalar_lea.vmem %s1675_s8, %s902_s17  ;;  %s946_s30 = sld [smem:[#allocation3 + %s944_s19]] }
  0x76   : > { %v904_v42 = vld [vmem:[%s903_s29] sm:$0x1]  ;;  %v919_v43 = vstv %s1905_s18  ;;  %s1920_s4 = sld [smem:[#allocation5 + %s961_s23]]  ;;  %s1005_s10 = sadd.s32 51, %s1662_s26 }
  0x77   : > { %v890_v44 = vadd.f32 %v889_v41, %v875_v40  ;;  %v906_v45 = vmul.f32 %v905_v39, %v904_v42  ;;  %s917_s6 = scalar_lea.vmem %s1675_s8, %s916_s21  ;;  %s963_s7 = sld [smem:[#allocation3 + %s961_s23]] }
  0x78   : > { %v918_v46 = vld [vmem:[%s917_s6] sm:$0x1]  ;;  %v934_v47 = vstv %s1910_s22  ;;  %s1925_s9 = sld [smem:[#allocation5 + %s975_s28]]  ;;  %s1022_s18 = sadd.s32 52, %s1662_s26 }
  0x79   : > { %891 = vst [vmem:[#allocation2 + $0xa] sm:$0x1] %v890_v44  ;;  %v920_v48 = vmul.f32 %v919_v43, %v918_v46  ;;  %s932_s11 = scalar_lea.vmem %s1675_s8, %s931_s25  ;;  %s977_s15 = sld [smem:[#allocation3 + %s975_s28]] }
  0x7a   : > { %v933_v49 = vld [vmem:[%s932_s11] sm:$0x1]  ;;  %v949_v50 = vstv %s1915_s27  ;;  %s1930_s17 = sld [smem:[#allocation5 + %s990_s5]]  ;;  %s1036_s22 = sadd.s32 53, %s1662_s26 }
  0x7b   : > { %v921_v51 = vadd.f32 %v920_v48, %v906_v45  ;;  %v935_v52 = vmul.f32 %v934_v47, %v933_v49  ;;  %s947_s19 = scalar_lea.vmem %s1675_s8, %s946_s30  ;;  %s992_s20 = sld [smem:[#allocation3 + %s990_s5]] }
  0x7c   : > { %v948_v53 = vld [vmem:[%s947_s19] sm:$0x1]  ;;  %v966_v54 = vstv %s1920_s4  ;;  %s1935_s21 = sld [smem:[#allocation5 + %s1005_s10]]  ;;  %s1051_s27 = sadd.s32 54, %s1662_s26 }
  0x7d   : > { %v936_v55 = vadd.f32 %v935_v52, %v921_v51  ;;  %v950_v56 = vmul.f32 %v949_v50, %v948_v53  ;;  %s964_s23 = scalar_lea.vmem %s1675_s8, %s963_s7  ;;  %s1007_s24 = sld [smem:[#allocation3 + %s1005_s10]] }
  0x7e   : > { %v965_v57 = vld [vmem:[%s964_s23] sm:$0x1]  ;;  %v980_v58 = vstv %s1925_s9  ;;  %s1940_s25 = sld [smem:[#allocation5 + %s1022_s18]]  ;;  %s1066_s4 = sadd.s32 55, %s1662_s26 }
  0x7f   : > { %v951_v59 = vadd.f32 %v950_v56, %v936_v55  ;;  %v967_v60 = vmul.f32 %v966_v54, %v965_v57  ;;  %s978_s28 = scalar_lea.vmem %s1675_s8, %s977_s15  ;;  %s1024_s29 = sld [smem:[#allocation3 + %s1022_s18]] }
  0x80   : > { %v979_v61 = vld [vmem:[%s978_s28] sm:$0x1]  ;;  %v995_v62 = vstv %s1930_s17  ;;  %s1945_s30 = sld [smem:[#allocation5 + %s1036_s22]]  ;;  %s1083_s9 = sadd.s32 56, %s1662_s26 }
  0x81   : > { %952 = vst [vmem:[#allocation2 + $0xb] sm:$0x1] %v951_v59  ;;  %v981_v63 = vmul.f32 %v980_v58, %v979_v61  ;;  %s993_s5 = scalar_lea.vmem %s1675_s8, %s992_s20  ;;  %s1038_s6 = sld [smem:[#allocation3 + %s1036_s22]] }
  0x82   : > { %v994_v0 = vld [vmem:[%s993_s5] sm:$0x1]  ;;  %v1010_v1 = vstv %s1935_s21  ;;  %s1950_s7 = sld [smem:[#allocation5 + %s1051_s27]]  ;;  %s1097_s17 = sadd.s32 57, %s1662_s26 }
  0x83   : > { %v982_v2 = vadd.f32 %v981_v63, %v967_v60  ;;  %v996_v3 = vmul.f32 %v995_v62, %v994_v0  ;;  %s1008_s10 = scalar_lea.vmem %s1675_s8, %s1007_s24  ;;  %s1053_s11 = sld [smem:[#allocation3 + %s1051_s27]] }
  0x84   : > { %v1009_v5 = vld [vmem:[%s1008_s10] sm:$0x1]  ;;  %v1027_v6 = vstv %s1940_s25  ;;  %s1955_s15 = sld [smem:[#allocation5 + %s1066_s4]]  ;;  %s1112_s21 = sadd.s32 58, %s1662_s26 }
  0x85   : > { %v997_v7 = vadd.f32 %v996_v3, %v982_v2  ;;  %v1011_v8 = vmul.f32 %v1010_v1, %v1009_v5  ;;  %s1025_s18 = scalar_lea.vmem %s1675_s8, %s1024_s29  ;;  %s1068_s19 = sld [smem:[#allocation3 + %s1066_s4]] }
  0x86   : > { %v1026_v9 = vld [vmem:[%s1025_s18] sm:$0x1]  ;;  %v1041_v10 = vstv %s1945_s30  ;;  %s1960_s20 = sld [smem:[#allocation5 + %s1083_s9]]  ;;  %s1127_s25 = sadd.s32 59, %s1662_s26 }
  0x87   : > { %v1012_v11 = vadd.f32 %v1011_v8, %v997_v7  ;;  %v1028_v12 = vmul.f32 %v1027_v6, %v1026_v9  ;;  %s1039_s22 = scalar_lea.vmem %s1675_s8, %s1038_s6  ;;  %s1085_s23 = sld [smem:[#allocation3 + %s1083_s9]] }
  0x88   : > { %v1040_v14 = vld [vmem:[%s1039_s22] sm:$0x1]  ;;  %v1056_v15 = vstv %s1950_s7  ;;  %s1965_s24 = sld [smem:[#allocation5 + %s1097_s17]]  ;;  %s1144_s30 = sadd.s32 60, %s1662_s26 }
  0x89   : > { %1013 = vst [vmem:[#allocation2 + $0xc] sm:$0x1] %v1012_v11  ;;  %v1042_v16 = vmul.f32 %v1041_v10, %v1040_v14  ;;  %s1054_s27 = scalar_lea.vmem %s1675_s8, %s1053_s11  ;;  %s1099_s28 = sld [smem:[#allocation3 + %s1097_s17]] }
  0x8a   : > { %v1055_v17 = vld [vmem:[%s1054_s27] sm:$0x1]  ;;  %v1071_v18 = vstv %s1955_s15  ;;  %s1970_s29 = sld [smem:[#allocation5 + %s1112_s21]]  ;;  %s1158_s7 = sadd.s32 61, %s1662_s26 }
  0x8b   : > { %v1043_v19 = vadd.f32 %v1042_v16, %v1028_v12  ;;  %v1057_v20 = vmul.f32 %v1056_v15, %v1055_v17  ;;  %s1069_s4 = scalar_lea.vmem %s1675_s8, %s1068_s19  ;;  %s1114_s5 = sld [smem:[#allocation3 + %s1112_s21]] }
  0x8c   : > { %v1070_v21 = vld [vmem:[%s1069_s4] sm:$0x1]  ;;  %v1088_v22 = vstv %s1960_s20  ;;  %s1975_s6 = sld [smem:[#allocation5 + %s1127_s25]]  ;;  %s1173_s15 = sadd.s32 62, %s1662_s26 }
  0x8d   : > { %v1058_v23 = vadd.f32 %v1057_v20, %v1043_v19  ;;  %v1072_v24 = vmul.f32 %v1071_v18, %v1070_v21  ;;  %s1086_s9 = scalar_lea.vmem %s1675_s8, %s1085_s23  ;;  %s1129_s10 = sld [smem:[#allocation3 + %s1127_s25]] }
  0x8e   : > { %v1087_v25 = vld [vmem:[%s1086_s9] sm:$0x1]  ;;  %v1102_v26 = vstv %s1965_s24  ;;  %s1980_s11 = sld [smem:[#allocation5 + %s1144_s30]]  ;;  %s1188_s20 = sadd.s32 63, %s1662_s26 }
  0x8f   : > { %v1073_v27 = vadd.f32 %v1072_v24, %v1058_v23  ;;  %v1089_v28 = vmul.f32 %v1088_v22, %v1087_v25  ;;  %s1100_s17 = scalar_lea.vmem %s1675_s8, %s1099_s28  ;;  %s1146_s18 = sld [smem:[#allocation3 + %s1144_s30]] }
  0x90   : > { %v1101_v29 = vld [vmem:[%s1100_s17] sm:$0x1]  ;;  %v1117_v30 = vstv %s1970_s29  ;;  %s1159_s19 = sld [smem:[#allocation5 + %s1158_s7]] }
  0x91   : > { %1074 = vst [vmem:[#allocation2 + $0xd] sm:$0x1] %v1073_v27  ;;  %v1103_v31 = vmul.f32 %v1102_v26, %v1101_v29  ;;  %s1115_s21 = scalar_lea.vmem %s1675_s8, %s1114_s5  ;;  %s1160_s22 = sld [smem:[#allocation3 + %s1158_s7]] }
  0x92   : > { %v1116_v32 = vld [vmem:[%s1115_s21] sm:$0x1]  ;;  %v1132_v33 = vstv %s1975_s6  ;;  %s1174_s23 = sld [smem:[#allocation5 + %s1173_s15]] }
  0x93   : > { %v1104_v34 = vadd.f32 %v1103_v31, %v1089_v28  ;;  %v1118_v35 = vmul.f32 %v1117_v30, %v1116_v32  ;;  %s1130_s24 = scalar_lea.vmem %s1675_s8, %s1129_s10  ;;  %s1175_s25 = sld [smem:[#allocation3 + %s1173_s15]] }
  0x94   : > { %v1131_v36 = vld [vmem:[%s1130_s24] sm:$0x1]  ;;  %v1149_v37 = vstv %s1980_s11  ;;  %s1189_s27 = sld [smem:[#allocation5 + %s1188_s20]] }
  0x95   : > { %v1119_v38 = vadd.f32 %v1118_v35, %v1104_v34  ;;  %v1133_v39 = vmul.f32 %v1132_v33, %v1131_v36  ;;  %s1147_s26 = scalar_lea.vmem %s1675_s8, %s1146_s18  ;;  %s1190_s28 = sld [smem:[#allocation3 + %s1188_s20]] }
  0x96   : > { %v1148_v40 = vld [vmem:[%s1147_s26] sm:$0x1]  ;;  %v1163_v41 = vstv %s1159_s19 }
  0x97   : > { %v1134_v42 = vadd.f32 %v1133_v39, %v1119_v38  ;;  %v1150_v43 = vmul.f32 %v1149_v37, %v1148_v40  ;;  %s1161_s29 = scalar_lea.vmem %s1675_s8, %s1160_s22 }
  0x98   : > { %v1162_v44 = vld [vmem:[%s1161_s29] sm:$0x1]  ;;  %v1178_v45 = vstv %s1174_s23 }
  0x99   : > { %1135 = vst [vmem:[#allocation2 + $0xe] sm:$0x1] %v1134_v42  ;;  %v1164_v46 = vmul.f32 %v1163_v41, %v1162_v44  ;;  %s1176_s30 = scalar_lea.vmem %s1675_s8, %s1175_s25 }
  0x9a   : > { %v1177_v47 = vld [vmem:[%s1176_s30] sm:$0x1]  ;;  %v1193_v48 = vstv %s1189_s27 }
  0x9b   : > { %v1165_v49 = vadd.f32 %v1164_v46, %v1150_v43  ;;  %v1179_v50 = vmul.f32 %v1178_v45, %v1177_v47  ;;  %s1191_s4 = scalar_lea.vmem %s1675_s8, %s1190_s28  ;;  %s1485_s8 = sshll.u32 %s2025_s12, 4 }
  0x9c   : > { %v1192_v51 = vld [vmem:[%s1191_s4] sm:$0x1]  ;;  %s219_s7 = scalar_lea.vmem %s2018_s3, %s1485_s8 }
  0x9d   : > { %v1180_v52 = vadd.f32 %v1179_v50, %v1165_v49  ;;  %v1194_v53 = vmul.f32 %v1193_v48, %v1192_v51 }
  0x9f   : > { %v1195_v54 = vadd.f32 %v1194_v53, %v1180_v52 }
  0xa1   : > { %1196 = vst [vmem:[#allocation2 + $0xf] sm:$0x1] %v1195_v54 }
  0xa8   : > { %v1198_v55 = vld [vmem:[#allocation2 + $0x8] sm:$0xff] }
  0xa9   : > { %v1203_v56 = vmul.f32 %v1198_v55, %v1198_v55 }
  0xab   : > { %v1205_v57 = vsel %vm1201_vm0, %v1203_v56, 0.0 }
  0xac   : > { %1208 = vadd.xlane.f32.xlu0 %v1205_v57 }
  0xdf   : > { %v1207_v58 = vpop.xlane.xlu0 %1206 }
  0xe0   : > { %v1210_v59 = vadd.f32 1e-12, %v1207_v58 }
  0xe2   : > { %1531 = vrsqrt.f32 %v1210_v59  ;;  %vm1218_vm2 = vweird.f32 %v1210_v59 }
  0xe8   : > { %v1532_v60 = vpop.eup %1531 }
  0xe9   : > { %v1213_v61 = vmul.f32 %v1532_v60, %v1210_v59  ;;  %vm1219_vm1 = vweird.f32 %v1532_v60 }
  0xea   : > { %vm1220_vm3 = vmor %vm1218_vm2, %vm1219_vm1 }
  0xeb   : > { %v1214_v62 = vmul.f32 %v1532_v60, %v1213_v61 }
  0xed   : > { %v1215_v63 = vmul.f32 0.5, %v1214_v62 }
  0xef   : > { %v1216_v0 = vsub.f32 1.5, %v1215_v63 }
  0xf1   : > { %v1217_v1 = vmul.f32 %v1532_v60, %v1216_v0 }
  0xf3   : > { %v1221_v2 = vsel %vm1220_vm3, %v1532_v60, %v1217_v1 }
  0xf4   : > { %v1232_v3 = vmul.f32 %v1221_v2, %v1874_v13 }
  0xf6   : > { %v1234_v5 = vsel %vm1201_vm0, %v1232_v3, %v1874_v13 }
  0xf7   : > { %1236 = vst [vmem:[%s219_s7] sm:$0xff] %v1234_v5 }
 0x11f   : > { %v1209_v6 = vpop.xlane.xlu0 %1208 }
 0x120   : > { %v1211_v7 = vadd.f32 1e-12, %v1209_v6 }
 0x122   : > { %1533 = vrsqrt.f32 %v1211_v7  ;;  %vm1228_vm5 = vweird.f32 %v1211_v7 }
 0x128   : > { %v1534_v8 = vpop.eup %1533 }
 0x129   : > { %v1223_v9 = vmul.f32 %v1534_v8, %v1211_v7  ;;  %vm1229_vm4 = vweird.f32 %v1534_v8 }
 0x12a   : > { %vm1230_vm6 = vmor %vm1228_vm5, %vm1229_vm4 }
 0x12b   : > { %v1224_v10 = vmul.f32 %v1534_v8, %v1223_v9 }
 0x12d   : > { %v1225_v11 = vmul.f32 0.5, %v1224_v10 }
 0x12f   : > { %v1226_v12 = vsub.f32 1.5, %v1225_v11 }
 0x131   : > { %v1227_v14 = vmul.f32 %v1534_v8, %v1226_v12 }
 0x133   : > { %v1231_v15 = vsel %vm1230_vm6, %v1534_v8, %v1227_v14 }
 0x134   : > { %v1233_v16 = vmul.f32 %v1231_v15, %v1198_v55 }
 0x136   : > { %v1235_v17 = vsel %vm1201_vm0, %v1233_v16, %v1198_v55 }
 0x137   : > { %1237 = vst [vmem:[%s219_s7 + $0x8] sm:$0xff] %v1235_v17 }
 0x138 PF: > { %s15_s14 = sadd.s32 1, %s1595_s14   ;;  %s2020_s12 = smov %s1591_s13 }
 0x139   : > { %p12_p8 = scmp.ge.s32.totalorder %s15_s14, 6   ;;  %s2021_s13 = smov %s2023_s16 }
 0x13b   :  { %14 = sbr.rel (!%p12_p8) target bundleno = 3 (0x3), region = 135 }
 0x140   :  { %1268 = vsyncpa [#allocation4], 1 }
 0x141   :  { %1270 = vsyncpa [#allocation4 + $0x1], 1 }
 0x142   :  { %1271 = vsyncpa [#allocation6], 1 }

</bundles_post_ra>
